<compile_context>
chip_gen: v7x
topology: tpu7x:2x2x1
jax: 0.10.0
libtpu: 0.0.40
codegen_flags: <defaults>
</compile_context>

<pallas_src>
import math

import jax
import jax.numpy as jnp
from jax.experimental import pallas as pl
from jax.experimental.pallas import tpu as pltpu


_SQRT_2_OVER_PI = math.sqrt(2.0 / math.pi)


def _gelu_new(x):
    # GPT-2 "new" gelu: 0.5*x*(1 + tanh(sqrt(2/pi)*(x + 0.044715*x^3)))
    # factored as x*(0.5 + 0.5*tanh(u)): one fewer VPU multiply; tanh -> EUP slot.
    u = _SQRT_2_OVER_PI * (x + 0.044715 * (x * x * x))
    return x * (0.5 + 0.5 * jnp.tanh(u))


def _round_up(n, m):
    return -(-n // m) * m


# --------------------------------------------------------------------------
# Kernels
# --------------------------------------------------------------------------
def mlp_resident_kernel(x_ref, w_in_ref, b_in_ref, w_out_ref, b_out_ref, o_ref):
    # x_ref: (tm, d_model); weights fully resident; o_ref: (tm, d_model).
    a1 = jnp.dot(x_ref[...], w_in_ref[...], preferred_element_type=jnp.float32)
    a1 = a1 + b_in_ref[...].astype(jnp.float32)           # broadcast (1, d_mlp)
    g = _gelu_new(a1)
    out = jnp.dot(g.astype(w_out_ref.dtype), w_out_ref[...],
                  preferred_element_type=jnp.float32)
    out = out + b_out_ref[...].astype(jnp.float32)         # broadcast (1, d_model)
    o_ref[...] = out.astype(o_ref.dtype)                   # lane-dense full-width store


def mlp_streaming_kernel(x_ref, w_in_ref, b_in_ref, w_out_ref, b_out_ref,
                         o_ref, acc_ref):
    # x_ref:    (tm, d_model)
    # w_in_ref: (d_model, tk)   k-th column chunk of W_in
    # b_in_ref: (1, tk)         k-th chunk of b_in
    # w_out_ref:(tk, d_model)   k-th row chunk of W_out
    # b_out_ref:(1, d_model)
    # o_ref:    (tm, d_model)   resident across the k axis
    # acc_ref:  (tm, d_model)   f32 scratch accumulator
    k = pl.program_id(1)

    @pl.when(k == 0)
    def _init():
        # Seed the accumulator with b_out (saves one f32 add at finalize).
        acc_ref[...] = jnp.broadcast_to(
            b_out_ref[...].astype(jnp.float32), acc_ref.shape)

    a1 = jnp.dot(x_ref[...], w_in_ref[...], preferred_element_type=jnp.float32)
    a1 = a1 + b_in_ref[...].astype(jnp.float32)
    g = _gelu_new(a1)
    acc_ref[...] += jnp.dot(g.astype(w_out_ref.dtype), w_out_ref[...],
                            preferred_element_type=jnp.float32)

    @pl.when(k == pl.num_programs(1) - 1)
    def _finalize():
        o_ref[...] = acc_ref[...].astype(o_ref.dtype)


# --------------------------------------------------------------------------
# Wrapper
# --------------------------------------------------------------------------
def _single_buffer_spec(block_shape, index_map):
    """BlockSpec for a grid-invariant (weight) block, single VMEM buffer if
    the current JAX supports pipeline_mode=pl.Buffered(1)."""
    if hasattr(pl, "Buffered"):
        try:
            return pl.BlockSpec(block_shape, index_map,
                                pipeline_mode=pl.Buffered(1))
        except Exception:
            pass
    return pl.BlockSpec(block_shape, index_map)


def mlp_forward(x, w_in, b_in, w_out, b_out, *, tm=None, tk=None,
                vmem_limit_bytes=None, force_streaming=False):
    """x: (batch, posn, d_model) -> (batch, posn, d_model)"""
    batch, posn, d_model = x.shape
    d_mlp = w_in.shape[1]
    M = batch * posn
    out_dtype = x.dtype

    # ---- VMEM budget: v7x has 64 MiB physical, v5e/v6e 128 MiB ----
    if vmem_limit_bytes is None:
        try:
            phys = pltpu.get_tpu_info().vmem_capacity_bytes
        except Exception:
            phys = 64 * 1024 * 1024
        vmem_limit_bytes = min(int(phys * 0.85), 110 * 1024 * 1024)
    budget = int(vmem_limit_bytes * 0.9)   # headroom for compiler scratch

    # ---- row tile: big enough to be compute-bound, >=2 tiles for v7x's 2 TCs,
    #      but no wasteful padding for tiny (decode-like) M. ----
    min_row = 16  # satisfies both f32 (8,128) and bf16 (16,128) min tiles
    if tm is None:
        if M <= 256:
            tm = _round_up(M, min_row)
        elif M <= 1024:
            tm = 256
        else:
            tm = 512
    tm = max(min_row, _round_up(min(tm, _round_up(M, min_row)), min_row))
    M_pad = _round_up(M, tm)
    grid_i = M_pad // tm

    x2d = x.reshape(M, d_model)
    if M_pad != M:
        x2d = jnp.pad(x2d, ((0, M_pad - M), (0, 0)))

    in_sz = x.dtype.itemsize
    w_sz = w_in.dtype.itemsize
    out_sz = jnp.dtype(out_dtype).itemsize
    b_out2d = b_out.reshape(1, d_model)

    weight_elems = 2 * d_model * d_mlp + d_mlp + d_model   # W_in, W_out, b_in, b_out
    io_bytes = 2 * tm * d_model * (in_sz + out_sz)          # double-buffered x / out tiles
    temp_bytes = 4 * tm * (d_mlp + d_model)                 # f32 a1/g + out temporaries
    resident_double = 2 * w_sz * weight_elems + io_bytes + temp_bytes
    resident_single = 1 * w_sz * weight_elems + io_bytes + temp_bytes

    use_resident = (not force_streaming) and (
        resident_double <= budget
        or (resident_single <= budget and hasattr(pl, "Buffered")))

    # ---------------- resident-weight path ----------------
    if use_resident:
        need_single_buffer = resident_double > budget
        wspec = _single_buffer_spec if need_single_buffer else pl.BlockSpec
        b_in2d = b_in.reshape(1, d_mlp)
        out2d = pl.pallas_call(
            mlp_resident_kernel,
            out_shape=jax.ShapeDtypeStruct((M_pad, d_model), out_dtype),
            grid_spec=pltpu.PrefetchScalarGridSpec(
                num_scalar_prefetch=0,
                grid=(grid_i,),
                in_specs=[
                    pl.BlockSpec((tm, d_model), lambda i: (i, 0)),   # x rows
                    wspec((d_model, d_mlp), lambda i: (0, 0)),       # W_in (resident)
                    wspec((1, d_mlp), lambda i: (0, 0)),             # b_in
                    wspec((d_mlp, d_model), lambda i: (0, 0)),       # W_out (resident)
                    wspec((1, d_model), lambda i: (0, 0)),           # b_out
                ],
                out_specs=pl.BlockSpec((tm, d_model), lambda i: (i, 0)),
            ),
            compiler_params=pltpu.CompilerParams(
                dimension_semantics=("parallel",),
                vmem_limit_bytes=vmem_limit_bytes,
            ),
        )(x2d, w_in, b_in2d, w_out, b_out2d)
        return out2d[:M].reshape(batch, posn, d_model)

    # ---------------- streaming (k-tiled) path ----------------
    if tk is None:
        tk = min(_round_up(d_mlp, 256), 2048)
    tk = max(128, _round_up(tk, 128))
    tk = min(tk, _round_up(d_mlp, 128))

    def _stream_bytes(tk_):
        return (2 * w_sz * (2 * d_model * tk_ + tk_ + d_model)   # dbl-buf weight chunks
                + io_bytes
                + 4 * tm * d_model                               # f32 accumulator
                + 4 * tm * tk_)                                  # f32 a1/g temp

    while tk > 128 and _stream_bytes(tk) > budget:
        tk = max(128, tk // 2)

    # Pad d_mlp: zero W_in cols -> a1 pad = 0 -> gelu(0) = 0 -> 0 @ zero W_out rows.
    K_pad = _round_up(d_mlp, tk)
    if K_pad != d_mlp:
        w_in = jnp.pad(w_in, ((0, 0), (0, K_pad - d_mlp)))
        b_in = jnp.pad(b_in, (0, K_pad - d_mlp))
        w_out = jnp.pad(w_out, ((0, K_pad - d_mlp), (0, 0)))
    b_in2d = b_in.reshape(1, K_pad)

    grid = (grid_i, K_pad // tk)   # (parallel rows, arbitrary reduction)

    out2d = pl.pallas_call(
        mlp_streaming_kernel,
        out_shape=jax.ShapeDtypeStruct((M_pad, d_model), out_dtype),
        grid_spec=pltpu.PrefetchScalarGridSpec(
            num_scalar_prefetch=0,
            grid=grid,
            in_specs=[
                pl.BlockSpec((tm, d_model), lambda i, k: (i, 0)),   # x rows
                pl.BlockSpec((d_model, tk), lambda i, k: (0, k)),   # W_in chunk
                pl.BlockSpec((1, tk), lambda i, k: (0, k)),         # b_in chunk
                pl.BlockSpec((tk, d_model), lambda i, k: (k, 0)),   # W_out chunk
                pl.BlockSpec((1, d_model), lambda i, k: (0, 0)),    # b_out
            ],
            out_specs=pl.BlockSpec((tm, d_model), lambda i, k: (i, 0)),
            scratch_shapes=[pltpu.VMEM((tm, d_model), jnp.float32)],
        ),
        compiler_params=pltpu.CompilerParams(
            dimension_semantics=("parallel", "arbitrary"),
            vmem_limit_bytes=vmem_limit_bytes,
        ),
    )(x2d, w_in, b_in2d, w_out, b_out2d)

    return out2d[:M].reshape(batch, posn, d_model)


def mlp_reference(x, w_in, b_in, w_out, b_out):
    a1 = jnp.einsum("bpd,dm->bpm", x.astype(jnp.float32), w_in.astype(jnp.float32)) + b_in
    g = _gelu_new(a1)
    return jnp.einsum("bpm,md->bpd", g, w_out.astype(jnp.float32)) + b_out


if __name__ == "__main__":
    # Small shapes consistent with the module's forward (scaled-down Config):
    # batch=2, posn=64, d_model=256, d_mlp=512.
    batch, posn, d_model, d_mlp = 2, 64, 256, 512
    init_range = 0.02

    key = jax.random.PRNGKey(0)
    kx, kwi, kwo = jax.random.split(key, 3)

    x = jax.random.normal(kx, (batch, posn, d_model), dtype=jnp.float32)
    # Deterministic parameter init mirroring nn.init.normal_(std=init_range)
    w_in = init_range * jax.random.normal(kwi, (d_model, d_mlp), dtype=jnp.float32)
    w_out = init_range * jax.random.normal(kwo, (d_mlp, d_model), dtype=jnp.float32)
    b_in = jnp.zeros((d_mlp,), dtype=jnp.float32)
    b_out = jnp.zeros((d_model,), dtype=jnp.float32)

    ref = mlp_reference(x, w_in, b_in, w_out, b_out)

    # 1) Default path: weights fully VMEM-resident, single row grid axis.
    out = jax.block_until_ready(mlp_forward(x, w_in, b_in, w_out, b_out))
    assert out.shape == (batch, posn, d_model)
    assert jnp.allclose(out, ref, atol=1e-4, rtol=1e-4), "resident-path mismatch"

    # 2) Streaming path: force the k-tiled accumulator (d_mlp split into 2 chunks).
    out_s = jax.block_until_ready(
        mlp_forward(x, w_in, b_in, w_out, b_out, tk=256, force_streaming=True))
    assert jnp.allclose(out_s, ref, atol=1e-4, rtol=1e-4), "streaming-path mismatch"

    # 3) Tiny-M path: M=16 rows -> tm shrinks to 16 instead of padding to 128.
    x_small = x[:, :8, :]
    out_small = jax.block_until_ready(mlp_forward(x_small, w_in, b_in, w_out, b_out))
    ref_small = mlp_reference(x_small, w_in, b_in, w_out, b_out)
    assert jnp.allclose(out_small, ref_small, atol=1e-4, rtol=1e-4), "tiny-M mismatch"

    # 4) bf16 operands (f32 accumulation inside the kernel), looser tolerance.
    out_bf16 = jax.block_until_ready(
        mlp_forward(x.astype(jnp.bfloat16), w_in.astype(jnp.bfloat16),
                    b_in.astype(jnp.bfloat16), w_out.astype(jnp.bfloat16),
                    b_out.astype(jnp.bfloat16)))
    assert jnp.allclose(out_bf16.astype(jnp.float32), ref,
                        atol=3e-2, rtol=3e-2), "bf16 mismatch"

    print("KERNEL_OK")
</pallas_src>

<mosaic_0001>
module attributes {stable_mosaic.version = 11 : i64} {
  func.func @mlp_resident_kernel(%arg0: i32, %arg1: memref<128x256xf32, #tpu.memory_space<vmem>>, %arg2: memref<256x512xf32, #tpu.memory_space<vmem>>, %arg3: memref<1x512xf32, #tpu.memory_space<vmem>>, %arg4: memref<512x256xf32, #tpu.memory_space<vmem>>, %arg5: memref<1x256xf32, #tpu.memory_space<vmem>>, %arg6: memref<128x256xf32, #tpu.memory_space<vmem>>) attributes {dimension_semantics = [#tpu.dimension_semantics<parallel>], iteration_bounds = array<i64: 1>, scalar_prefetch = 0 : i64, scratch_operands = 0 : i64, tpu.core_type = #tpu.core_type<tc>, window_params = [{transform_indices = @transform_0, window_bounds = array<i64: 128, 256>}, {pipeline_mode = #tpu.pipeline_mode<synchronous>, transform_indices = @transform_1, window_bounds = array<i64: 256, 512>}, {pipeline_mode = #tpu.pipeline_mode<synchronous>, transform_indices = @transform_2, window_bounds = array<i64: 1, 512>}, {pipeline_mode = #tpu.pipeline_mode<synchronous>, transform_indices = @transform_3, window_bounds = array<i64: 512, 256>}, {pipeline_mode = #tpu.pipeline_mode<synchronous>, transform_indices = @transform_4, window_bounds = array<i64: 1, 256>}, {transform_indices = @transform_5, window_bounds = array<i64: 128, 256>}]} {
    %c0 = arith.constant 0 : index
    %c0_0 = arith.constant 0 : index
    %0 = vector.load %arg1[%c0, %c0_0] : memref<128x256xf32, #tpu.memory_space<vmem>>, vector<128x256xf32>
    %c0_1 = arith.constant 0 : index
    %c0_2 = arith.constant 0 : index
    %1 = vector.load %arg2[%c0_1, %c0_2] : memref<256x512xf32, #tpu.memory_space<vmem>>, vector<256x512xf32>
    %cst = arith.constant dense<0.000000e+00> : vector<128x512xf32>
    %2 = tpu.matmul %0, %1, %cst {dimension_numbers = #tpu.dot_dimension_numbers<[1], [0], [0], [1], [0, 0, 1, 1], [], []>} : vector<128x256xf32>, vector<256x512xf32>, vector<128x512xf32> -> vector<128x512xf32>
    %c0_3 = arith.constant 0 : index
    %c0_4 = arith.constant 0 : index
    %3 = vector.load %arg3[%c0_3, %c0_4] : memref<1x512xf32, #tpu.memory_space<vmem>>, vector<1x512xf32>
    %4 = vector.broadcast %3 : vector<1x512xf32> to vector<128x512xf32>
    %5 = arith.addf %2, %4 : vector<128x512xf32>
    %6 = arith.mulf %5, %5 : vector<128x512xf32>
    %7 = arith.mulf %6, %5 : vector<128x512xf32>
    %cst_5 = arith.constant 4.471500e-02 : f32
    %8 = vector.broadcast %cst_5 : f32 to vector<128x512xf32>
    %9 = arith.mulf %8, %7 : vector<128x512xf32>
    %10 = arith.addf %5, %9 : vector<128x512xf32>
    %cst_6 = arith.constant 0.797884583 : f32
    %11 = vector.broadcast %cst_6 : f32 to vector<128x512xf32>
    %12 = arith.mulf %11, %10 : vector<128x512xf32>
    %13 = math.tanh %12 : vector<128x512xf32>
    %cst_7 = arith.constant 5.000000e-01 : f32
    %14 = vector.broadcast %cst_7 : f32 to vector<128x512xf32>
    %15 = arith.mulf %14, %13 : vector<128x512xf32>
    %cst_8 = arith.constant 5.000000e-01 : f32
    %16 = vector.broadcast %cst_8 : f32 to vector<128x512xf32>
    %17 = arith.addf %16, %15 : vector<128x512xf32>
    %18 = arith.mulf %5, %17 : vector<128x512xf32>
    %c0_9 = arith.constant 0 : index
    %c0_10 = arith.constant 0 : index
    %19 = vector.load %arg4[%c0_9, %c0_10] : memref<512x256xf32, #tpu.memory_space<vmem>>, vector<512x256xf32>
    %cst_11 = arith.constant dense<0.000000e+00> : vector<128x256xf32>
    %20 = tpu.matmul %18, %19, %cst_11 {dimension_numbers = #tpu.dot_dimension_numbers<[1], [0], [0], [1], [0, 0, 1, 1], [], []>} : vector<128x512xf32>, vector<512x256xf32>, vector<128x256xf32> -> vector<128x256xf32>
    %c0_12 = arith.constant 0 : index
    %c0_13 = arith.constant 0 : index
    %21 = vector.load %arg5[%c0_12, %c0_13] : memref<1x256xf32, #tpu.memory_space<vmem>>, vector<1x256xf32>
    %22 = vector.broadcast %21 : vector<1x256xf32> to vector<128x256xf32>
    %23 = arith.addf %20, %22 : vector<128x256xf32>
    %c0_14 = arith.constant 0 : index
    %c0_15 = arith.constant 0 : index
    %24 = vector.load %arg6[%c0_14, %c0_15] : memref<128x256xf32, #tpu.memory_space<vmem>>, vector<128x256xf32>
    tpu.vector_store %arg6[%c0_14, %c0_15], %23 {strides = array<i32>} : memref<128x256xf32, #tpu.memory_space<vmem>>, vector<128x256xf32>,
    return
  }
  func.func @transform_0(%arg0: i32) -> (i32, i32) {
    %c0_i32 = arith.constant 0 : i32
    %c0_i32_0 = arith.constant 0 : i32
    return %arg0, %c0_i32 : i32, i32
  }
  func.func @transform_1(%arg0: i32) -> (i32, i32) {
    %c0_i32 = arith.constant 0 : i32
    %c0_i32_0 = arith.constant 0 : i32
    %c0_i32_1 = arith.constant 0 : i32
    return %c0_i32, %c0_i32_0 : i32, i32
  }
  func.func @transform_2(%arg0: i32) -> (i32, i32) {
    %c0_i32 = arith.constant 0 : i32
    %c0_i32_0 = arith.constant 0 : i32
    %c0_i32_1 = arith.constant 0 : i32
    return %c0_i32, %c0_i32_0 : i32, i32
  }
  func.func @transform_3(%arg0: i32) -> (i32, i32) {
    %c0_i32 = arith.constant 0 : i32
    %c0_i32_0 = arith.constant 0 : i32
    %c0_i32_1 = arith.constant 0 : i32
    return %c0_i32, %c0_i32_0 : i32, i32
  }
  func.func @transform_4(%arg0: i32) -> (i32, i32) {
    %c0_i32 = arith.constant 0 : i32
    %c0_i32_0 = arith.constant 0 : i32
    %c0_i32_1 = arith.constant 0 : i32
    return %c0_i32, %c0_i32_0 : i32, i32
  }
  func.func @transform_5(%arg0: i32) -> (i32, i32) {
    %c0_i32 = arith.constant 0 : i32
    %c0_i32_0 = arith.constant 0 : i32
    return %arg0, %c0_i32 : i32, i32
  }
}

</mosaic_0001>

<bundles_post_ra>
// kernel: tpu_custom_call.1
= control target key start
LH: loop header
LB: loop body
LE: loop exit
PB: predicated region body
PF: predicated region fallthrough
CT: control target
= control target key end

     0   :  { %10 = vsyncpa [#allocation3], 0  ;;  %s3447_s0 = inlined_call_operand.hbm [shape: f32[128,256], index: 0, kind: input, shape index: {}]   ;;  %s3448_s1 = inlined_call_operand.hbm [shape: f32[256,512], index: 1, kind: input, shape index: {}]   ;;  %s3449_s2 = inlined_call_operand.vmem [shape: f32[1,512], index: 2, kind: input, shape index: {}]   ;;  %s3450_s3 = inlined_call_operand.hbm [shape: f32[512,256], index: 3, kind: input, shape index: {}]   ;;  %s3451_s4 = inlined_call_operand.vmem [shape: f32[1,256], index: 4, kind: input, shape index: {}]   ;;  %s3452_s5 = inlined_call_operand.hbm [shape: f32[128,256], index: 5, kind: output, shape index: {}]  }
   0x1   :  { %11 = vsyncpa [#allocation6], 0 }
   0x2   :  { %12 = vsyncpa [#allocation4], 0  ;;  %s2204_s18 = smov [#allocation5]   ;;  %s2110_s22 = scalar_lea.hbm %s3448_s1, 16384 }
   0x3   :  { %s30_s19 = sshll.u32 %s2204_s18, 4  ;;  %p2111_p0 = scmp.ne.s32.totalorder %s3448_s1, %s2110_s22  ;;  %s31_s19 = int_to_ptr.vmem [resolvable:$true] %s30_s19 }
   0x4   :  { %p2114_p1 = scmp.lt.u32.totalorder %s2110_s22, %s3448_s1 }
   0x6   :  { %p2116_p2 = pnand %p2114_p1, %p2111_p0 }
   0x8   :  { %2119 = shalt.err (!%p2116_p2)
}
   0x9   :  { %s2120_s27 = scalar_lea.vmem %s31_s19, 16384  ;;  %p2125_p4 = scmp.lt.s32.totalorder %s31_s19, %s31_s19 }
   0xa   :  { %p2121_p3 = scmp.ne.s32.totalorder %s31_s19, %s2120_s27  ;;  %p2126_p5 = scmp.lt.s32.totalorder %s2120_s27, %s2120_s27 }
   0xc   :  { %p2127_p6 = por %p2126_p5, %p2125_p4 }
   0xe   :  { %p2128_p7 = pnand %p2127_p6, %p2121_p3 }
  0x10   :  { %2131 = shalt.err (!%p2128_p7)
}
  0x11   :  { %s2205_s28 = smov 512   ;;  %s2206_s29 = smov 32  }
  0x12   :  { %36 = dma.hbm_to_vmem [thread:$0]  %s3448_s1, 16384, %s31_s19, [#allocation6], %s2205_s28, %s2205_s28, %s2206_s29  }
  0x13   :  { %s2207_s7 = smov [#allocation2]   ;;  %s2132_s11 = scalar_lea.hbm %s3447_s0, 4096 }
  0x14   :  { %s18_s8 = sshll.u32 %s2207_s7, 4  ;;  %p2133_p8 = scmp.ne.s32.totalorder %s3447_s0, %s2132_s11  ;;  %s19_s8 = int_to_ptr.vmem [resolvable:$true] %s18_s8 }
  0x15   :  { %p2136_p9 = scmp.lt.u32.totalorder %s2132_s11, %s3447_s0 }
  0x17   :  { %p2138_p10 = pnand %p2136_p9, %p2133_p8 }
  0x19   :  { %2141 = shalt.err (!%p2138_p10)
}
  0x1a   :  { %s2142_s16 = scalar_lea.vmem %s19_s8, 4096  ;;  %p2147_p12 = scmp.lt.s32.totalorder %s19_s8, %s19_s8 }
  0x1b   :  { %p2143_p11 = scmp.ne.s32.totalorder %s19_s8, %s2142_s16  ;;  %p2148_p13 = scmp.lt.s32.totalorder %s2142_s16, %s2142_s16 }
  0x1d   :  { %p2149_p0 = por %p2148_p13, %p2147_p12 }
  0x1f   :  { %p2150_p1 = pnand %p2149_p0, %p2143_p11 }
  0x21   :  { %2153 = shalt.err (!%p2150_p1)
}
  0x22   :  { %s2208_s1 = smov 256   ;;  %s2209_s17 = smov 16  }
  0x23   :  { %24 = dma.hbm_to_vmem [thread:$0]  %s3447_s0, 4096, %s19_s8, [#allocation3], %s2208_s1, %s2208_s1, %s2209_s17  }
  0x24   :  { %s2210_s20 = smov [#allocation7]   ;;  %s2154_s24 = scalar_lea.hbm %s3450_s3, 16384 }
  0x25   :  { %s44_s21 = sshll.u32 %s2210_s20, 4  ;;  %p2155_p2 = scmp.ne.s32.totalorder %s3450_s3, %s2154_s24  ;;  %s45_s21 = int_to_ptr.vmem [resolvable:$true] %s44_s21 }
  0x26   :  { %p2158_p3 = scmp.lt.u32.totalorder %s2154_s24, %s3450_s3 }
  0x28   :  { %p2160_p4 = pnand %p2158_p3, %p2155_p2 }
  0x2a   :  { %2163 = shalt.err (!%p2160_p4)
}
  0x2b   :  { %s2164_s29 = scalar_lea.vmem %s45_s21, 16384  ;;  %p2169_p6 = scmp.lt.s32.totalorder %s45_s21, %s45_s21 }
  0x2c   :  { %p2165_p5 = scmp.ne.s32.totalorder %s45_s21, %s2164_s29  ;;  %p2170_p7 = scmp.lt.s32.totalorder %s2164_s29, %s2164_s29 }
  0x2e   :  { %p2171_p8 = por %p2170_p7, %p2169_p6 }
  0x30   :  { %p2172_p9 = pnand %p2171_p8, %p2165_p5 }
  0x32   :  { %2175 = shalt.err (!%p2172_p9)
}
  0x33   :  { %50 = dma.hbm_to_vmem [thread:$0]  %s3450_s3, 16384, %s45_s21, [#allocation6], %s2208_s1, %s2208_s1, %s2209_s17  }
  0x34   :  { %2198 = dma.done.wait [#allocation3], 4096  }
  0x35   :  { %2199 = vsyncadd [#allocation3], 4294963200 }
  0x36   :  { %2200 = dma.done.wait [#allocation6], 32768  }
  0x37   :  { %2201 = vsyncadd [#allocation6], 4294934528  ;;  %v95_v0 = vld [vmem:[#allocation5 + $0x8] sm:$0xff]  ;;  %v94_v2 = vld [vmem:[#allocation5] sm:$0xff] }
  0x38   :  { %v99_v1 = vld [vmem:[#allocation5 + $0x28] sm:$0xff]  ;;  %v98_v4 = vld [vmem:[#allocation5 + $0x20] sm:$0xff] }
  0x39   :  { %v1654_v3 = vpack.c.bf16 %v99_v1, %v95_v0  ;;  %v103_v5 = vld [vmem:[#allocation5 + $0x48] sm:$0xff]  ;;  %v1656_v7 = vpack.c.bf16 %v98_v4, %v94_v2  ;;  %v102_v9 = vld [vmem:[#allocation5 + $0x40] sm:$0xff] }
  0x3a   :  { %v107_v6 = vld [vmem:[#allocation5 + $0x68] sm:$0xff]  ;;  %v106_v10 = vld [vmem:[#allocation5 + $0x60] sm:$0xff] }
  0x3b   :  { %v1658_v8 = vpack.c.bf16 %v107_v6, %v103_v5  ;;  %v111_v11 = vld [vmem:[#allocation5 + $0x88] sm:$0xff]  ;;  %1655 = vmatprep.subr.bf16.mxu1 %v1654_v3  ;;  %v1660_v13 = vpack.c.bf16 %v106_v10, %v102_v9  ;;  %v110_v15 = vld [vmem:[#allocation5 + $0x80] sm:$0xff] }
  0x3c   :  { %v115_v12 = vld [vmem:[#allocation5 + $0xa8] sm:$0xff]  ;;  %1657 = vmatpush1.bf16.msra.mxu1 %v1656_v7  ;;  %v114_v16 = vld [vmem:[#allocation5 + $0xa0] sm:$0xff] }
  0x3d   :  { %1659 = vmatprep.subr.bf16.mxu1 %v1658_v8  ;;  %v1662_v14 = vpack.c.bf16 %v115_v12, %v111_v11  ;;  %v119_v17 = vld [vmem:[#allocation5 + $0xc8] sm:$0xff]  ;;  %v1664_v19 = vpack.c.bf16 %v114_v16, %v110_v15  ;;  %v118_v21 = vld [vmem:[#allocation5 + $0xc0] sm:$0xff] }
  0x3e   :  { %v123_v18 = vld [vmem:[#allocation5 + $0xe8] sm:$0xff]  ;;  %v122_v22 = vld [vmem:[#allocation5 + $0xe0] sm:$0xff] }
  0x3f   :  { %v1666_v20 = vpack.c.bf16 %v123_v18, %v119_v17  ;;  %v127_v23 = vld [vmem:[#allocation5 + $0x108] sm:$0xff]  ;;  %v1668_v25 = vpack.c.bf16 %v122_v22, %v118_v21  ;;  %v126_v27 = vld [vmem:[#allocation5 + $0x100] sm:$0xff] }
  0x40   :  { %1661 = vmatpush1.bf16.msra.mxu1 %v1660_v13  ;;  %v131_v24 = vld [vmem:[#allocation5 + $0x128] sm:$0xff]  ;;  %v130_v28 = vld [vmem:[#allocation5 + $0x120] sm:$0xff] }
  0x41   :  { %1663 = vmatprep.subr.bf16.mxu1 %v1662_v14  ;;  %v1670_v26 = vpack.c.bf16 %v131_v24, %v127_v23  ;;  %v135_v29 = vld [vmem:[#allocation5 + $0x148] sm:$0xff]  ;;  %v1672_v31 = vpack.c.bf16 %v130_v28, %v126_v27  ;;  %v134_v33 = vld [vmem:[#allocation5 + $0x140] sm:$0xff] }
  0x42   :  { %v139_v30 = vld [vmem:[#allocation5 + $0x168] sm:$0xff]  ;;  %v138_v34 = vld [vmem:[#allocation5 + $0x160] sm:$0xff] }
  0x43   :  { %v1674_v32 = vpack.c.bf16 %v139_v30, %v135_v29  ;;  %v143_v35 = vld [vmem:[#allocation5 + $0x188] sm:$0xff]  ;;  %v1676_v37 = vpack.c.bf16 %v138_v34, %v134_v33  ;;  %v142_v39 = vld [vmem:[#allocation5 + $0x180] sm:$0xff]  ;;  %v101_v33 = vld [vmem:[#allocation5 + $0x38] sm:$0xff] }
  0x44   :  { %1665 = vmatpush1.bf16.msra.mxu1 %v1664_v19  ;;  %v147_v36 = vld [vmem:[#allocation5 + $0x1a8] sm:$0xff]  ;;  %v146_v40 = vld [vmem:[#allocation5 + $0x1a0] sm:$0xff] }
  0x45   :  { %1667 = vmatprep.subr.bf16.mxu1 %v1666_v20  ;;  %v1678_v38 = vpack.c.bf16 %v147_v36, %v143_v35  ;;  %v2284_v41 = vld [vmem:[#allocation2 + $0x8] sm:$0xff]  ;;  %v1680_v44 = vpack.c.bf16 %v146_v40, %v142_v39  ;;  %v150_v46 = vld [vmem:[#allocation5 + $0x1c0] sm:$0xff]  ;;  %v96_v36 = vld [vmem:[#allocation5 + $0x10] sm:$0xff] }
  0x46   :  { %v151_v42 = vld [vmem:[#allocation5 + $0x1c8] sm:$0xff]  ;;  %308 = vmatprep.mubr.f32.mxu1 %v2284_v41  ;;  %v154_v47 = vld [vmem:[#allocation5 + $0x1e0] sm:$0xff]  ;;  %v105_v39 = vld [vmem:[#allocation5 + $0x58] sm:$0xff] }
  0x47   :  { %v155_v43 = vld [vmem:[#allocation5 + $0x1e8] sm:$0xff]  ;;  %v1684_v50 = vpack.c.bf16 %v154_v47, %v150_v46  ;;  %v158_v52 = vld [vmem:[#allocation5 + $0x200] sm:$0xff]  ;;  %v109_v40 = vld [vmem:[#allocation5 + $0x78] sm:$0xff] }
  0x48   :  { %1669 = vmatpush1.bf16.msra.mxu1 %v1668_v25  ;;  %v1682_v45 = vpack.c.bf16 %v155_v43, %v151_v42  ;;  %v159_v48 = vld [vmem:[#allocation5 + $0x208] sm:$0xff]  ;;  %v162_v53 = vld [vmem:[#allocation5 + $0x220] sm:$0xff]  ;;  %v2289_v42 = vld [vmem:[#allocation2 + $0x18] sm:$0xff] }
  0x49   :  { %1671 = vmatprep.subr.bf16.mxu1 %v1670_v26  ;;  %v163_v49 = vld [vmem:[#allocation5 + $0x228] sm:$0xff]  ;;  %v1688_v56 = vpack.c.bf16 %v162_v53, %v158_v52  ;;  %v166_v58 = vld [vmem:[#allocation5 + $0x240] sm:$0xff]  ;;  %v104_v43 = vld [vmem:[#allocation5 + $0x50] sm:$0xff]  ;;  %v1722_v53 = vpack.c.bf16 %v109_v40, %v105_v39 }
  0x4a   :  { %v1686_v51 = vpack.c.bf16 %v163_v49, %v159_v48  ;;  %v167_v54 = vld [vmem:[#allocation5 + $0x248] sm:$0xff]  ;;  %v170_v59 = vld [vmem:[#allocation5 + $0x260] sm:$0xff]  ;;  %v1145_v46 = vld [vmem:[#allocation7 + $0x18] sm:$0xff] }
  0x4b   :  { %v171_v55 = vld [vmem:[#allocation5 + $0x268] sm:$0xff]  ;;  %v1692_v62 = vpack.c.bf16 %v170_v59, %v166_v58  ;;  %v174_v0 = vld [vmem:[#allocation5 + $0x280] sm:$0xff]  ;;  %v1149_v52 = vld [vmem:[#allocation7 + $0x38] sm:$0xff] }
  0x4c   :  { %1673 = vmatpush1.bf16.msra.mxu1 %v1672_v31  ;;  %v1690_v57 = vpack.c.bf16 %v171_v55, %v167_v54  ;;  %v175_v60 = vld [vmem:[#allocation5 + $0x288] sm:$0xff]  ;;  %v178_v1 = vld [vmem:[#allocation5 + $0x2a0] sm:$0xff]  ;;  %v113_v54 = vld [vmem:[#allocation5 + $0x98] sm:$0xff] }
  0x4d   :  { %1675 = vmatprep.subr.bf16.mxu1 %v1674_v32  ;;  %v179_v61 = vld [vmem:[#allocation5 + $0x2a8] sm:$0xff]  ;;  %v1696_v4 = vpack.c.bf16 %v178_v1, %v174_v0  ;;  %v182_v6 = vld [vmem:[#allocation5 + $0x2c0] sm:$0xff]  ;;  %v97_v32 = vld [vmem:[#allocation5 + $0x18] sm:$0xff] }
  0x4e   :  { %v1694_v63 = vpack.c.bf16 %v179_v61, %v175_v60  ;;  %v183_v2 = vld [vmem:[#allocation5 + $0x2c8] sm:$0xff]  ;;  %v186_v7 = vld [vmem:[#allocation5 + $0x2e0] sm:$0xff]  ;;  %v1718_v35 = vpack.c.bf16 %v101_v33, %v97_v32  ;;  %v1148_v58 = vld [vmem:[#allocation7 + $0x30] sm:$0xff] }
  0x4f   :  { %v187_v3 = vld [vmem:[#allocation5 + $0x2e8] sm:$0xff]  ;;  %v1700_v10 = vpack.c.bf16 %v186_v7, %v182_v6  ;;  %v190_v12 = vld [vmem:[#allocation5 + $0x300] sm:$0xff]  ;;  %v117_v59 = vld [vmem:[#allocation5 + $0xb8] sm:$0xff] }
  0x50   :  { %1677 = vmatpush1.bf16.msra.mxu1 %v1676_v37  ;;  %v1698_v5 = vpack.c.bf16 %v187_v3, %v183_v2  ;;  %v191_v8 = vld [vmem:[#allocation5 + $0x308] sm:$0xff]  ;;  %v194_v13 = vld [vmem:[#allocation5 + $0x320] sm:$0xff]  ;;  %v100_v37 = vld [vmem:[#allocation5 + $0x30] sm:$0xff] }
  0x51   :  { %1679 = vmatprep.subr.bf16.mxu1 %v1678_v38  ;;  %v195_v9 = vld [vmem:[#allocation5 + $0x328] sm:$0xff]  ;;  %v1704_v16 = vpack.c.bf16 %v194_v13, %v190_v12  ;;  %v198_v18 = vld [vmem:[#allocation5 + $0x340] sm:$0xff]  ;;  %v1720_v48 = vpack.c.bf16 %v100_v37, %v96_v36  ;;  %v1153_v61 = vld [vmem:[#allocation7 + $0x58] sm:$0xff] }
  0x52   :  { %v1702_v11 = vpack.c.bf16 %v195_v9, %v191_v8  ;;  %v199_v14 = vld [vmem:[#allocation5 + $0x348] sm:$0xff]  ;;  %v202_v19 = vld [vmem:[#allocation5 + $0x360] sm:$0xff]  ;;  %v1152_v3 = vld [vmem:[#allocation7 + $0x50] sm:$0xff] }
  0x53   :  { %v203_v15 = vld [vmem:[#allocation5 + $0x368] sm:$0xff]  ;;  %v1708_v22 = vpack.c.bf16 %v202_v19, %v198_v18  ;;  %v206_v24 = vld [vmem:[#allocation5 + $0x380] sm:$0xff]  ;;  %v116_v6 = vld [vmem:[#allocation5 + $0xb0] sm:$0xff] }
  0x54   :  { %1681 = vmatpush1.bf16.msra.mxu1 %v1680_v44  ;;  %v1706_v17 = vpack.c.bf16 %v203_v15, %v199_v14  ;;  %v207_v20 = vld [vmem:[#allocation5 + $0x388] sm:$0xff]  ;;  %v210_v25 = vld [vmem:[#allocation5 + $0x3a0] sm:$0xff]  ;;  %v108_v44 = vld [vmem:[#allocation5 + $0x70] sm:$0xff] }
  0x55   :  { %1683 = vmatprep.subr.bf16.mxu1 %v1682_v45  ;;  %v211_v21 = vld [vmem:[#allocation5 + $0x3a8] sm:$0xff]  ;;  %v1712_v28 = vpack.c.bf16 %v210_v25, %v206_v24  ;;  %v214_v30 = vld [vmem:[#allocation5 + $0x3c0] sm:$0xff]  ;;  %v1724_v0 = vpack.c.bf16 %v108_v44, %v104_v43  ;;  %v121_v7 = vld [vmem:[#allocation5 + $0xd8] sm:$0xff] }
  0x56   :  { %v1710_v23 = vpack.c.bf16 %v211_v21, %v207_v20  ;;  %v215_v26 = vld [vmem:[#allocation5 + $0x3c8] sm:$0xff]  ;;  %v218_v31 = vld [vmem:[#allocation5 + $0x3e0] sm:$0xff]  ;;  %v125_v9 = vld [vmem:[#allocation5 + $0xf8] sm:$0xff] }
  0x57   :  { %v219_v27 = vld [vmem:[#allocation5 + $0x3e8] sm:$0xff]  ;;  %v1716_v34 = vpack.c.bf16 %v218_v31, %v214_v30  ;;  %v2287_v38 = vld [vmem:[#allocation2] sm:$0xff]  ;;  %v2301_v15 = vld [vmem:[#allocation2 + $0x38] sm:$0xff]  ;;  %v1730_v18 = vpack.c.bf16 %v125_v9, %v121_v7 }
  0x58   :  { %1685 = vmatpush1.bf16.msra.mxu1 %v1684_v50  ;;  %v1714_v29 = vpack.c.bf16 %v219_v27, %v215_v26  ;;  %v1143_v45 = vld [vmem:[#allocation7 + $0x8] sm:$0xff]  ;;  %v1142_v47 = vld [vmem:[#allocation7] sm:$0xff]  ;;  %v1144_v50 = vld [vmem:[#allocation7 + $0x10] sm:$0xff] }
  0x59   :  { %1687 = vmatprep.subr.bf16.mxu1 %v1686_v51  ;;  %v1782_v49 = vpack.c.bf16 %v1145_v46, %v1143_v45  ;;  %v1147_v51 = vld [vmem:[#allocation7 + $0x28] sm:$0xff]  ;;  %v1784_v55 = vpack.c.bf16 %v1144_v50, %v1142_v47  ;;  %v1150_v2 = vld [vmem:[#allocation7 + $0x40] sm:$0xff]  ;;  %v120_v19 = vld [vmem:[#allocation5 + $0xd0] sm:$0xff] }
  0x5a   :  { %v1151_v60 = vld [vmem:[#allocation7 + $0x48] sm:$0xff]  ;;  %v2298_v12 = vld [vmem:[#allocation2 + $0x20] sm:$0xff]  ;;  %v1792_v13 = vpack.c.bf16 %v1152_v3, %v1150_v2  ;;  %v124_v20 = vld [vmem:[#allocation5 + $0xf0] sm:$0xff] }
  0x5b   :  { %1783 = vmatprep.subr.bf16.mxu0 %v1782_v49  ;;  %v2295_v1 = vld [vmem:[#allocation2 + $0x28] sm:$0xff]  ;;  %v1790_v8 = vpack.c.bf16 %v1153_v61, %v1151_v60  ;;  %v129_v21 = vld [vmem:[#allocation5 + $0x118] sm:$0xff]  ;;  %v2304_v26 = vld [vmem:[#allocation2 + $0x30] sm:$0xff] }
  0x5c   :  { %1689 = vmatpush1.bf16.msra.mxu1 %v1688_v56  ;;  %v1786_v56 = vpack.c.bf16 %v1149_v52, %v1147_v51  ;;  %1785 = vmatpush1.bf16.msra.mxu0 %v1784_v55  ;;  %v1159_v24 = vld [vmem:[#allocation7 + $0x88] sm:$0xff]  ;;  %v1161_v25 = vld [vmem:[#allocation7 + $0x98] sm:$0xff]  ;;  %v1158_v30 = vld [vmem:[#allocation7 + $0x80] sm:$0xff] }
  0x5d   :  { %1691 = vmatprep.subr.bf16.mxu1 %v1690_v57  ;;  %v1146_v57 = vld [vmem:[#allocation7 + $0x20] sm:$0xff]  ;;  %v1160_v31 = vld [vmem:[#allocation7 + $0x90] sm:$0xff]  ;;  %v1798_v36 = vpack.c.bf16 %v1161_v25, %v1159_v24  ;;  %v141_v37 = vld [vmem:[#allocation5 + $0x178] sm:$0xff] }
  0x5e   :  { %1787 = vmatprep.subr.bf16.mxu0 %v1786_v56  ;;  %v128_v33 = vld [vmem:[#allocation5 + $0x110] sm:$0xff]  ;;  %v1163_v39 = vld [vmem:[#allocation7 + $0xa8] sm:$0xff]  ;;  %v1165_v40 = vld [vmem:[#allocation7 + $0xb8] sm:$0xff]  ;;  %v1800_v44 = vpack.c.bf16 %v1160_v31, %v1158_v30 }
  0x5f   :  { %v2310_v43 = vld [vmem:[#allocation2 + $0x40] sm:$0xff]  ;;  %v2313_v46 = vld [vmem:[#allocation2 + $0x58] sm:$0xff]  ;;  %v136_v50 = vld [vmem:[#allocation5 + $0x150] sm:$0xff] }
  0x60   :  { %1693 = vmatpush1.bf16.msra.mxu1 %v1692_v62  ;;  %v2292_v62 = vld [vmem:[#allocation2 + $0x10] sm:$0xff]  ;;  %v1162_v47 = vld [vmem:[#allocation7 + $0xa0] sm:$0xff]  ;;  %v145_v52 = vld [vmem:[#allocation5 + $0x198] sm:$0xff] }
  0x61   :  { %1695 = vmatprep.subr.bf16.mxu1 %v1694_v63  ;;  %v1788_v63 = vpack.c.bf16 %v1148_v58, %v1146_v57  ;;  %v140_v51 = vld [vmem:[#allocation5 + $0x170] sm:$0xff]  ;;  %v1167_v55 = vld [vmem:[#allocation7 + $0xc8] sm:$0xff]  ;;  %v1169_v56 = vld [vmem:[#allocation7 + $0xd8] sm:$0xff] }
  0x62   :  { %v2316_v57 = vld [vmem:[#allocation2 + $0x50] sm:$0xff]  ;;  %v2319_v60 = vld [vmem:[#allocation2 + $0x68] sm:$0xff]  ;;  %v1166_v61 = vld [vmem:[#allocation7 + $0xc0] sm:$0xff] }
  0x63   :  { %1789 = vmatpush1.bf16.msra.mxu0 %v1788_v63  ;;  %v1168_v63 = vld [vmem:[#allocation7 + $0xd0] sm:$0xff]  ;;  %v1171_v7 = vld [vmem:[#allocation7 + $0xe8] sm:$0xff] }
  0x64   :  { %1697 = vmatpush1.bf16.msra.mxu1 %v1696_v4  ;;  %v1726_v4 = vpack.c.bf16 %v117_v59, %v113_v54  ;;  %1791 = vmatprep.subr.bf16.mxu0 %v1790_v8  ;;  %v149_v54 = vld [vmem:[#allocation5 + $0x1b8] sm:$0xff]  ;;  %v1740_v59 = vpack.c.bf16 %v140_v51, %v136_v50  ;;  %v144_v2 = vld [vmem:[#allocation5 + $0x190] sm:$0xff]  ;;  %v1808_v9 = vpack.c.bf16 %v1168_v63, %v1166_v61 }
  0x65   :  { %1699 = vmatprep.subr.bf16.mxu1 %v1698_v5  ;;  %v112_v5 = vld [vmem:[#allocation5 + $0x90] sm:$0xff]  ;;  %v1173_v8 = vld [vmem:[#allocation7 + $0xf8] sm:$0xff] }
  0x66   :  { %v1728_v14 = vpack.c.bf16 %v116_v6, %v112_v5  ;;  %v148_v3 = vld [vmem:[#allocation5 + $0x1b0] sm:$0xff]  ;;  %v1806_v5 = vpack.c.bf16 %v1169_v56, %v1167_v55  ;;  %v157_v6 = vld [vmem:[#allocation5 + $0x1f8] sm:$0xff]  ;;  %v2347_v55 = vld [vmem:[#allocation2 + $0xa0] sm:$0xff] }
  0x67   :  { %1793 = vmatpush1.bf16.msra.mxu0 %v1792_v13  ;;  %v1170_v13 = vld [vmem:[#allocation7 + $0xe0] sm:$0xff]  ;;  %v2329_v24 = vld [vmem:[#allocation2 + $0x70] sm:$0xff] }
  0x68   :  { %1701 = vmatpush1.bf16.msra.mxu1 %v1700_v10  ;;  %v1155_v10 = vld [vmem:[#allocation7 + $0x68] sm:$0xff]  ;;  %v160_v30 = vld [vmem:[#allocation5 + $0x210] sm:$0xff] }
  0x69   :  { %1703 = vmatprep.subr.bf16.mxu1 %v1702_v11  ;;  %v1157_v11 = vld [vmem:[#allocation7 + $0x78] sm:$0xff]  ;;  %v164_v31 = vld [vmem:[#allocation5 + $0x230] sm:$0xff] }
  0x6a   :  { %v176_v51 = vld [vmem:[#allocation5 + $0x290] sm:$0xff] }
  0x6b   :  { %v184_v61 = vld [vmem:[#allocation5 + $0x2d0] sm:$0xff] }
  0x6c   :  { %1705 = vmatpush1.bf16.msra.mxu1 %v1704_v16  ;;  %v1154_v16 = vld [vmem:[#allocation7 + $0x60] sm:$0xff]  ;;  %v188_v63 = vld [vmem:[#allocation5 + $0x2f0] sm:$0xff] }
  0x6d   :  { %1707 = vmatprep.subr.bf16.mxu1 %v1706_v17  ;;  %v1156_v17 = vld [vmem:[#allocation7 + $0x70] sm:$0xff] }
  0x6e   :  { %v1796_v27 = vpack.c.bf16 %v1156_v17, %v1154_v16  ;;  %v2325_v16 = vld [vmem:[#allocation2 + $0x78] sm:$0xff] }
  0x70   :  { %1709 = vmatpush1.bf16.msra.mxu1 %v1708_v22  ;;  %v1794_v22 = vpack.c.bf16 %v1157_v11, %v1155_v10  ;;  %v2323_v10 = vld [vmem:[#allocation2 + $0x60] sm:$0xff]  ;;  %v1744_v11 = vpack.c.bf16 %v148_v3, %v144_v2  ;;  %v197_v2 = vld [vmem:[#allocation5 + $0x338] sm:$0xff]  ;;  %v2353_v3 = vld [vmem:[#allocation2 + $0xb0] sm:$0xff] }
  0x71   :  { %1711 = vmatprep.subr.bf16.mxu1 %v1710_v23  ;;  %v133_v23 = vld [vmem:[#allocation5 + $0x138] sm:$0xff] }
  0x72   :  { %v1734_v32 = vpack.c.bf16 %v133_v23, %v129_v21  ;;  %1795 = vmatprep.subr.bf16.mxu0 %v1794_v22  ;;  %v161_v21 = vld [vmem:[#allocation5 + $0x218] sm:$0xff] }
  0x73   :  { %1797 = vmatpush1.bf16.msra.mxu0 %v1796_v27  ;;  %v165_v22 = vld [vmem:[#allocation5 + $0x238] sm:$0xff]  ;;  %v2331_v27 = vld [vmem:[#allocation2 + $0x88] sm:$0xff] }
  0x74   :  { %1713 = vmatpush1.bf16.msra.mxu1 %v1712_v28  ;;  %v1732_v28 = vpack.c.bf16 %v124_v20, %v120_v19  ;;  %1799 = vmatprep.subr.bf16.mxu0 %v1798_v36  ;;  %v156_v19 = vld [vmem:[#allocation5 + $0x1f0] sm:$0xff]  ;;  %v1810_v20 = vpack.c.bf16 %v1173_v8, %v1171_v7  ;;  %v2337_v36 = vld [vmem:[#allocation2 + $0x98] sm:$0xff] }
  0x75   :  { %1715 = vmatprep.subr.bf16.mxu1 %v1714_v29  ;;  %v2307_v29 = vld [vmem:[#allocation2 + $0x48] sm:$0xff]  ;;  %v192_v7 = vld [vmem:[#allocation5 + $0x310] sm:$0xff] }
  0x76   :  { %v196_v8 = vld [vmem:[#allocation5 + $0x330] sm:$0xff] }
  0x77   :  { %1801 = vmatpush1.bf16.msra.mxu0 %v1800_v44  ;;  %v177_v44 = vld [vmem:[#allocation5 + $0x298] sm:$0xff] }
  0x78   :  { %1717 = vmatpush1.bf16.msra.mxu1 %v1716_v34  ;;  %v132_v34 = vld [vmem:[#allocation5 + $0x130] sm:$0xff] }
  0x79   :  { %1719 = vmatprep.subr.bf16.mxu1 %v1718_v35  ;;  %v137_v35 = vld [vmem:[#allocation5 + $0x158] sm:$0xff]  ;;  %v1736_v45 = vpack.c.bf16 %v132_v34, %v128_v33  ;;  %v2335_v34 = vld [vmem:[#allocation2 + $0x80] sm:$0xff] }
  0x7a   :  { %v1738_v49 = vpack.c.bf16 %v141_v37, %v137_v35  ;;  %v173_v33 = vld [vmem:[#allocation5 + $0x278] sm:$0xff]  ;;  %v1752_v35 = vpack.c.bf16 %v164_v31, %v160_v30  ;;  %v208_v31 = vld [vmem:[#allocation5 + $0x390] sm:$0xff] }
  0x7b   :  { %309 = vmatmul.mubr.f32.vlgmr.msra.gmra.mrb[0].mxu1 %v2287_v38 }
  0x7c   :  { %1721 = vmatpush1.bf16.msra.mxu1 %v1720_v48  ;;  %314 = vmatprep.mubr.f32.mxu1 %v2289_v42  ;;  %v1164_v48 = vld [vmem:[#allocation7 + $0xb0] sm:$0xff] }
  0x7d   :  { %1723 = vmatprep.subr.bf16.mxu1 %v1722_v53  ;;  %v1802_v53 = vpack.c.bf16 %v1165_v40, %v1163_v39  ;;  %v1804_v58 = vpack.c.bf16 %v1164_v48, %v1162_v47  ;;  %v168_v39 = vld [vmem:[#allocation5 + $0x250] sm:$0xff] }
  0x7e   :  { %v172_v40 = vld [vmem:[#allocation5 + $0x270] sm:$0xff] }
  0x7f   :  { %315 = vmatmul.mubr.f32.gmra.mrb[2].mxu1 %v2292_v62  ;;  %1803 = vmatprep.subr.bf16.mxu0 %v1802_v53  ;;  %v2341_v47 = vld [vmem:[#allocation2 + $0x90] sm:$0xff]  ;;  %v1756_v48 = vpack.c.bf16 %v172_v40, %v168_v39  ;;  %v185_v53 = vld [vmem:[#allocation5 + $0x2d8] sm:$0xff] }
  0x80   :  { %1725 = vmatpush1.bf16.msra.mxu1 %v1724_v0  ;;  %320 = vmatprep.mubr.f32.mxu1 %v2295_v1  ;;  %v1742_v0 = vpack.c.bf16 %v149_v54, %v145_v52  ;;  %v180_v52 = vld [vmem:[#allocation5 + $0x2b0] sm:$0xff]  ;;  %v189_v54 = vld [vmem:[#allocation5 + $0x2f8] sm:$0xff] }
  0x81   :  { %1727 = vmatprep.subr.bf16.mxu1 %v1726_v4  ;;  %v153_v4 = vld [vmem:[#allocation5 + $0x1d8] sm:$0xff]  ;;  %1805 = vmatpush1.bf16.msra.mxu0 %v1804_v58  ;;  %v1760_v56 = vpack.c.bf16 %v180_v52, %v176_v51  ;;  %v1175_v52 = vld [vmem:[#allocation7 + $0x108] sm:$0xff] }
  0x82   :  { %v1746_v17 = vpack.c.bf16 %v157_v6, %v153_v4  ;;  %1807 = vmatprep.subr.bf16.mxu0 %v1806_v5  ;;  %v2349_v58 = vld [vmem:[#allocation2 + $0xb8] sm:$0xff]  ;;  %v1764_v4 = vpack.c.bf16 %v188_v63, %v184_v61  ;;  %v2355_v5 = vld [vmem:[#allocation2 + $0xc8] sm:$0xff] }
  0x83   :  { %321 = vmatmul.mubr.f32.gmra.mrb[4].mxu1 %v2298_v12  ;;  %v2373_v40 = vld [vmem:[#allocation2 + $0xf8] sm:$0xff] }
  0x84   :  { %1729 = vmatpush1.bf16.msra.mxu1 %v1728_v14  ;;  %326 = vmatprep.mubr.f32.mxu1 %v2301_v15  ;;  %v1172_v14 = vld [vmem:[#allocation7 + $0xf0] sm:$0xff]  ;;  %v1189_v63 = vld [vmem:[#allocation7 + $0x178] sm:$0xff] }
  0x85   :  { %1731 = vmatprep.subr.bf16.mxu1 %v1730_v18  ;;  %v152_v18 = vld [vmem:[#allocation5 + $0x1d0] sm:$0xff]  ;;  %1809 = vmatpush1.bf16.msra.mxu0 %v1808_v9  ;;  %v1812_v23 = vpack.c.bf16 %v1172_v14, %v1170_v13  ;;  %v201_v9 = vld [vmem:[#allocation5 + $0x358] sm:$0xff]  ;;  %v2359_v13 = vld [vmem:[#allocation2 + $0xc0] sm:$0xff]  ;;  %v1768_v14 = vpack.c.bf16 %v196_v8, %v192_v7 }
  0x86   :  { %v1748_v25 = vpack.c.bf16 %v156_v19, %v152_v18  ;;  %1811 = vmatprep.subr.bf16.mxu0 %v1810_v20  ;;  %v200_v19 = vld [vmem:[#allocation5 + $0x350] sm:$0xff]  ;;  %v1190_v8 = vld [vmem:[#allocation7 + $0x180] sm:$0xff] }
  0x87   :  { %327 = vmatmul.mubr.f32.gmra.mrb[6].mxu1 %v2304_v26  ;;  %v204_v20 = vld [vmem:[#allocation5 + $0x370] sm:$0xff] }
  0x88   :  { %1733 = vmatpush1.bf16.msra.mxu1 %v1732_v28  ;;  %332 = vmatprep.mubr.f32.mxu1 %v2307_v29  ;;  %v1750_v28 = vpack.c.bf16 %v165_v22, %v161_v21  ;;  %v209_v21 = vld [vmem:[#allocation5 + $0x398] sm:$0xff] }
  0x89   :  { %1735 = vmatprep.subr.bf16.mxu1 %v1734_v32  ;;  %v169_v32 = vld [vmem:[#allocation5 + $0x258] sm:$0xff]  ;;  %1813 = vmatpush1.bf16.msra.mxu0 %v1812_v23  ;;  %v2365_v23 = vld [vmem:[#allocation2 + $0xd0] sm:$0xff] }
  0x8a   :  { %v1754_v37 = vpack.c.bf16 %v173_v33, %v169_v32  ;;  %v213_v22 = vld [vmem:[#allocation5 + $0x3b8] sm:$0xff]  ;;  %v212_v32 = vld [vmem:[#allocation5 + $0x3b0] sm:$0xff] }
  0x8b   :  { %333 = vmatmul.mubr.f32.gmra.mrb[8].mxu1 %v2310_v43  ;;  %v1774_v30 = vpack.c.bf16 %v213_v22, %v209_v21  ;;  %v217_v33 = vld [vmem:[#allocation5 + $0x3d8] sm:$0xff]  ;;  %v1776_v39 = vpack.c.bf16 %v212_v32, %v208_v31  ;;  %v1198_v22 = vld [vmem:[#allocation7 + $0x1c0] sm:$0xff] }
  0x8c   :  { %1737 = vmatpush1.bf16.msra.mxu1 %v1736_v45  ;;  %338 = vmatprep.mubr.f32.mxu1 %v2313_v46  ;;  %v181_v45 = vld [vmem:[#allocation5 + $0x2b8] sm:$0xff]  ;;  %v1202_v32 = vld [vmem:[#allocation7 + $0x1e0] sm:$0xff] }
  0x8d   :  { %1739 = vmatprep.subr.bf16.mxu1 %v1738_v49  ;;  %v2343_v49 = vld [vmem:[#allocation2 + $0xa8] sm:$0xff]  ;;  %v1758_v50 = vpack.c.bf16 %v181_v45, %v177_v44  ;;  %v216_v45 = vld [vmem:[#allocation5 + $0x3d0] sm:$0xff] }
  0x8f   :  { %339 = vmatmul.mubr.f32.gmra.mrb[10].mxu1 %v2316_v57 }
  0x90   :  { %1741 = vmatpush1.bf16.msra.mxu1 %v1740_v59  ;;  %344 = vmatprep.mubr.f32.mxu1 %v2319_v60  ;;  %v1762_v59 = vpack.c.bf16 %v189_v54, %v185_v53  ;;  %v1176_v53 = vld [vmem:[#allocation7 + $0x110] sm:$0xff]  ;;  %v1185_v54 = vld [vmem:[#allocation7 + $0x158] sm:$0xff] }
  0x91   :  { %1743 = vmatprep.subr.bf16.mxu1 %v1742_v0  ;;  %v193_v0 = vld [vmem:[#allocation5 + $0x318] sm:$0xff] }
  0x92   :  { %v1766_v6 = vpack.c.bf16 %v197_v2, %v193_v0  ;;  %v1186_v2 = vld [vmem:[#allocation7 + $0x160] sm:$0xff] }
  0x93   :  { %345 = vmatmul.mubr.f32.gmra.mrb[12].mxu1 %v2323_v10 }
  0x94   :  { %1745 = vmatpush1.bf16.msra.mxu1 %v1744_v11  ;;  %350 = vmatprep.mubr.f32.mxu1 %v2325_v16  ;;  %v205_v11 = vld [vmem:[#allocation5 + $0x378] sm:$0xff] }
  0x95   :  { %1747 = vmatprep.subr.bf16.mxu1 %v1746_v17  ;;  %v2361_v17 = vld [vmem:[#allocation2 + $0xd8] sm:$0xff]  ;;  %v1770_v18 = vpack.c.bf16 %v205_v11, %v201_v9 }
  0x96   :  { %v1197_v11 = vld [vmem:[#allocation7 + $0x1b8] sm:$0xff] }
  0x97   :  { %351 = vmatmul.mubr.f32.gmra.mrb[14].mxu1 %v2329_v24 }
  0x98   :  { %1749 = vmatpush1.bf16.msra.mxu1 %v1748_v25  ;;  %356 = vmatprep.mubr.f32.mxu1 %v2331_v27  ;;  %v1772_v25 = vpack.c.bf16 %v204_v20, %v200_v19  ;;  %v1201_v20 = vld [vmem:[#allocation7 + $0x1d8] sm:$0xff] }
  0x99   :  { %1751 = vmatprep.subr.bf16.mxu1 %v1750_v28  ;;  %v2367_v28 = vld [vmem:[#allocation2 + $0xe8] sm:$0xff] }
  0x9b   :  { %357 = vmatmul.mubr.f32.gmra.mrb[16].mxu1 %v2335_v34 }
  0x9c   :  { %1753 = vmatpush1.bf16.msra.mxu1 %v1752_v35  ;;  %362 = vmatprep.mubr.f32.mxu1 %v2337_v36  ;;  %v221_v35 = vld [vmem:[#allocation5 + $0x3f8] sm:$0xff] }
  0x9d   :  { %1755 = vmatprep.subr.bf16.mxu1 %v1754_v37  ;;  %v2371_v37 = vld [vmem:[#allocation2 + $0xe0] sm:$0xff]  ;;  %v1778_v44 = vpack.c.bf16 %v221_v35, %v217_v33  ;;  %v1209_v35 = vld [vmem:[#allocation7 + $0x218] sm:$0xff] }
  0x9f   :  { %363 = vmatmul.mubr.f32.gmra.mrb[18].mxu1 %v2341_v47 }
  0xa0   :  { %1757 = vmatpush1.bf16.msra.mxu1 %v1756_v48  ;;  %368 = vmatprep.mubr.f32.mxu1 %v2343_v49  ;;  %v220_v48 = vld [vmem:[#allocation5 + $0x3f0] sm:$0xff] }
  0xa1   :  { %1759 = vmatprep.subr.bf16.mxu1 %v1758_v50  ;;  %v2377_v50 = vld [vmem:[#allocation2 + $0xf0] sm:$0xff]  ;;  %v1780_v51 = vpack.c.bf16 %v220_v48, %v216_v45  ;;  %v2435_v45 = vld [vmem:[#allocation7 + $0x228] sm:$0xff]  ;;  %v2437_v48 = vld [vmem:[#allocation7 + $0x238] sm:$0xff] }
  0xa3   :  { %369 = vmatmul.mubr.f32.gmra.mrb[20].mxu1 %v2347_v55 }
  0xa4   :  { %1761 = vmatpush1.bf16.msra.mxu1 %v1760_v56  ;;  %374 = vmatprep.mubr.f32.mxu1 %v2349_v58 }
  0xa5   :  { %1763 = vmatprep.subr.bf16.mxu1 %v1762_v59  ;;  %v1182_v59 = vld [vmem:[#allocation7 + $0x140] sm:$0xff] }
  0xa7   :  { %375 = vmatmul.mubr.f32.gmra.mrb[22].mxu1 %v2353_v3 }
  0xa8   :  { %1765 = vmatpush1.bf16.msra.mxu1 %v1764_v4  ;;  %380 = vmatprep.mubr.f32.mxu1 %v2355_v5 }
  0xa9   :  { %1767 = vmatprep.subr.bf16.mxu1 %v1766_v6  ;;  %v1193_v6 = vld [vmem:[#allocation7 + $0x198] sm:$0xff] }
  0xab   :  { %381 = vmatmul.mubr.f32.gmra.mrb[24].mxu1 %v2359_v13 }
  0xac   :  { %1769 = vmatpush1.bf16.msra.mxu1 %v1768_v14  ;;  %386 = vmatprep.mubr.f32.mxu1 %v2361_v17 }
  0xad   :  { %1771 = vmatprep.subr.bf16.mxu1 %v1770_v18  ;;  %v1194_v18 = vld [vmem:[#allocation7 + $0x1a0] sm:$0xff] }
  0xaf   :  { %387 = vmatmul.mubr.f32.gmra.mrb[26].mxu1 %v2365_v23 }
  0xb0   :  { %1773 = vmatpush1.bf16.msra.mxu1 %v1772_v25  ;;  %392 = vmatprep.mubr.f32.mxu1 %v2367_v28 }
  0xb1   :  { %1775 = vmatprep.subr.bf16.mxu1 %v1774_v30  ;;  %v1205_v30 = vld [vmem:[#allocation7 + $0x1f8] sm:$0xff] }
  0xb3   :  { %393 = vmatmul.mubr.f32.gmra.mrb[28].mxu1 %v2371_v37 }
  0xb4   :  { %1777 = vmatpush1.bf16.msra.mxu1 %v1776_v39  ;;  %398 = vmatprep.mubr.f32.mxu1 %v2373_v40 }
  0xb5   :  { %1779 = vmatprep.subr.bf16.mxu1 %v1778_v44  ;;  %v2433_v44 = vld [vmem:[#allocation7 + $0x210] sm:$0xff] }
  0xb7   :  { %399 = vmatmul.mubr.f32.gmra.mrb[30].mxu1 %v2377_v50 }
  0xb8   :  { %1781 = vmatpush1.bf16.msra.mxu1 %v1780_v51  ;;  %469 = vmatprep.mubr.f32.mxu1 %v2284_v41  ;;  %v1177_v41 = vld [vmem:[#allocation7 + $0x118] sm:$0xff]  ;;  %v2441_v51 = vld [vmem:[#allocation7 + $0x230] sm:$0xff] }
  0xbb   :  { %470 = vmatmul.mubr.f32.vlgmr.msra.gmra.mrb[32].mxu1 %v2287_v38  ;;  %v1814_v38 = vpack.c.bf16 %v1177_v41, %v1175_v52  ;;  %v2443_v41 = vld [vmem:[#allocation7 + $0x248] sm:$0xff] }
  0xbc   :  { %475 = vmatprep.mubr.f32.mxu1 %v2289_v42  ;;  %v1174_v42 = vld [vmem:[#allocation7 + $0x100] sm:$0xff] }
  0xbd   :  { %1815 = vmatprep.subr.bf16.mxu0 %v1814_v38  ;;  %v2445_v38 = vld [vmem:[#allocation7 + $0x258] sm:$0xff] }
  0xbf   :  { %476 = vmatmul.mubr.f32.gmra.mrb[34].mxu1 %v2292_v62  ;;  %v1816_v62 = vpack.c.bf16 %v1176_v53, %v1174_v42  ;;  %v2447_v42 = vld [vmem:[#allocation7 + $0x240] sm:$0xff] }
  0xc0   :  { %481 = vmatprep.mubr.f32.mxu1 %v2295_v1  ;;  %v1179_v1 = vld [vmem:[#allocation7 + $0x128] sm:$0xff] }
  0xc1   :  { %1817 = vmatpush1.bf16.msra.mxu0 %v1816_v62 }
  0xc3   :  { %482 = vmatmul.mubr.f32.gmra.mrb[36].mxu1 %v2298_v12  ;;  %v1181_v12 = vld [vmem:[#allocation7 + $0x138] sm:$0xff] }
  0xc4   :  { %487 = vmatprep.mubr.f32.mxu1 %v2301_v15  ;;  %v1818_v15 = vpack.c.bf16 %v1181_v12, %v1179_v1  ;;  %v2452_v1 = vld [vmem:[#allocation7 + $0x250] sm:$0xff]  ;;  %v2454_v12 = vld [vmem:[#allocation7 + $0x268] sm:$0xff] }
  0xc6   :  { %1819 = vmatprep.subr.bf16.mxu0 %v1818_v15  ;;  %v2456_v15 = vld [vmem:[#allocation7 + $0x278] sm:$0xff] }
  0xc7   :  { %488 = vmatmul.mubr.f32.gmra.mrb[38].mxu1 %v2304_v26  ;;  %v1178_v26 = vld [vmem:[#allocation7 + $0x120] sm:$0xff] }
  0xc8   :  { %493 = vmatprep.mubr.f32.mxu1 %v2307_v29  ;;  %v1180_v29 = vld [vmem:[#allocation7 + $0x130] sm:$0xff] }
  0xcb   :  { %494 = vmatmul.mubr.f32.gmra.mrb[40].mxu1 %v2310_v43  ;;  %v1820_v43 = vpack.c.bf16 %v1180_v29, %v1178_v26  ;;  %v2461_v29 = vld [vmem:[#allocation7 + $0x260] sm:$0xff] }
  0xcc   :  { %499 = vmatprep.mubr.f32.mxu1 %v2313_v46  ;;  %v1183_v46 = vld [vmem:[#allocation7 + $0x148] sm:$0xff] }
  0xcd   :  { %1821 = vmatpush1.bf16.msra.mxu0 %v1820_v43  ;;  %v1822_v56 = vpack.c.bf16 %v1185_v54, %v1183_v46  ;;  %v2463_v43 = vld [vmem:[#allocation7 + $0x270] sm:$0xff]  ;;  %v2465_v46 = vld [vmem:[#allocation7 + $0x288] sm:$0xff] }
  0xcf   :  { %500 = vmatmul.mubr.f32.gmra.mrb[42].mxu1 %v2316_v57  ;;  %v1184_v57 = vld [vmem:[#allocation7 + $0x150] sm:$0xff]  ;;  %1823 = vmatprep.subr.bf16.mxu0 %v1822_v56 }
  0xd0   :  { %505 = vmatprep.mubr.f32.mxu1 %v2319_v60  ;;  %v1824_v61 = vpack.c.bf16 %v1184_v57, %v1182_v59  ;;  %v1187_v60 = vld [vmem:[#allocation7 + $0x168] sm:$0xff]  ;;  %v2471_v59 = vld [vmem:[#allocation7 + $0x298] sm:$0xff]  ;;  %v2473_v57 = vld [vmem:[#allocation7 + $0x280] sm:$0xff] }
  0xd1   :  { %v1826_v0 = vpack.c.bf16 %v1189_v63, %v1187_v60  ;;  %v2595_v56 = vld [vmem:[#allocation7 + $0x330] sm:$0xff] }
  0xd2   :  { %1825 = vmatpush1.bf16.msra.mxu0 %v1824_v61  ;;  %v2475_v61 = vld [vmem:[#allocation7 + $0x290] sm:$0xff]  ;;  %3511 = vst [vmem:[#allocation29_spill] sm:$0xff] %v2595_v56 }
  0xd3   :  { %506 = vmatmul.mubr.f32.gmra.mrb[44].mxu1 %v2323_v10  ;;  %v1188_v10 = vld [vmem:[#allocation7 + $0x170] sm:$0xff]  ;;  %1827 = vmatprep.subr.bf16.mxu0 %v1826_v0 }
  0xd4   :  { %511 = vmatprep.mubr.f32.mxu1 %v2325_v16  ;;  %v1828_v4 = vpack.c.bf16 %v1188_v10, %v1186_v2  ;;  %v1191_v16 = vld [vmem:[#allocation7 + $0x188] sm:$0xff]  ;;  %v2588_v2 = vld [vmem:[#allocation7 + $0x320] sm:$0xff] }
  0xd5   :  { %v1830_v7 = vpack.c.bf16 %v1193_v6, %v1191_v16  ;;  %v2487_v16 = vld [vmem:[#allocation7 + $0x2b8] sm:$0xff]  ;;  %v2489_v6 = vld [vmem:[#allocation7 + $0x2a0] sm:$0xff]  ;;  %3510 = vst [vmem:[#allocation28_spill] sm:$0xff] %v2588_v2 }
  0xd6   :  { %1829 = vmatpush1.bf16.msra.mxu0 %v1828_v4  ;;  %v2485_v4 = vld [vmem:[#allocation7 + $0x2a8] sm:$0xff] }
  0xd7   :  { %512 = vmatmul.mubr.f32.gmra.mrb[46].mxu1 %v2329_v24  ;;  %v1192_v24 = vld [vmem:[#allocation7 + $0x190] sm:$0xff]  ;;  %1831 = vmatprep.subr.bf16.mxu0 %v1830_v7 }
  0xd8   :  { %517 = vmatprep.mubr.f32.mxu1 %v2331_v27  ;;  %v1832_v9 = vpack.c.bf16 %v1192_v24, %v1190_v8  ;;  %v1195_v27 = vld [vmem:[#allocation7 + $0x1a8] sm:$0xff] }
  0xd9   :  { %v1834_v14 = vpack.c.bf16 %v1197_v11, %v1195_v27  ;;  %v2499_v11 = vld [vmem:[#allocation7 + $0x2b0] sm:$0xff] }
  0xda   :  { %1833 = vmatpush1.bf16.msra.mxu0 %v1832_v9 }
  0xdb   :  { %518 = vmatmul.mubr.f32.gmra.mrb[48].mxu1 %v2335_v34  ;;  %v1196_v34 = vld [vmem:[#allocation7 + $0x1b0] sm:$0xff]  ;;  %1835 = vmatprep.subr.bf16.mxu0 %v1834_v14  ;;  %v2501_v14 = vld [vmem:[#allocation7 + $0x2c8] sm:$0xff] }
  0xdc   :  { %523 = vmatprep.mubr.f32.mxu1 %v2337_v36  ;;  %v1836_v19 = vpack.c.bf16 %v1196_v34, %v1194_v18  ;;  %v1199_v36 = vld [vmem:[#allocation7 + $0x1c8] sm:$0xff]  ;;  %3495 = vst [vmem:[#allocation13_spill] sm:$0xff] %v2501_v14  ;;  %v2503_v18 = vld [vmem:[#allocation7 + $0x2d8] sm:$0xff] }
  0xdd   :  { %v1838_v21 = vpack.c.bf16 %v1201_v20, %v1199_v36  ;;  %v2569_v36 = vld [vmem:[#allocation7 + $0x318] sm:$0xff] }
  0xde   :  { %1837 = vmatpush1.bf16.msra.mxu0 %v1836_v19  ;;  %3504 = vst [vmem:[#allocation22_spill] sm:$0xff] %v2569_v36 }
  0xdf   :  { %524 = vmatmul.mubr.f32.gmra.mrb[50].mxu1 %v2341_v47  ;;  %v1200_v47 = vld [vmem:[#allocation7 + $0x1d0] sm:$0xff]  ;;  %1839 = vmatprep.subr.bf16.mxu0 %v1838_v21  ;;  %v2513_v21 = vld [vmem:[#allocation7 + $0x2c0] sm:$0xff] }
  0xe0   :  { %529 = vmatprep.mubr.f32.mxu1 %v2343_v49  ;;  %v1840_v25 = vpack.c.bf16 %v1200_v47, %v1198_v22  ;;  %v1203_v49 = vld [vmem:[#allocation7 + $0x1e8] sm:$0xff]  ;;  %3496 = vst [vmem:[#allocation14_spill] sm:$0xff] %v2513_v21  ;;  %v2515_v22 = vld [vmem:[#allocation7 + $0x2d0] sm:$0xff] }
  0xe1   :  { %v1842_v31 = vpack.c.bf16 %v1205_v30, %v1203_v49  ;;  %3497 = vst [vmem:[#allocation15_spill] sm:$0xff] %v2515_v22 }
  0xe2   :  { %1841 = vmatpush1.bf16.msra.mxu0 %v1840_v25 }
  0xe3   :  { %530 = vmatmul.mubr.f32.gmra.mrb[52].mxu1 %v2347_v55  ;;  %v1204_v55 = vld [vmem:[#allocation7 + $0x1f0] sm:$0xff]  ;;  %1843 = vmatprep.subr.bf16.mxu0 %v1842_v31  ;;  %v2523_v31 = vld [vmem:[#allocation7 + $0x2e8] sm:$0xff] }
  0xe4   :  { %535 = vmatprep.mubr.f32.mxu1 %v2349_v58  ;;  %v1844_v33 = vpack.c.bf16 %v1204_v55, %v1202_v32  ;;  %v1207_v58 = vld [vmem:[#allocation7 + $0x208] sm:$0xff]  ;;  %3498 = vst [vmem:[#allocation16_spill] sm:$0xff] %v2523_v31  ;;  %v2525_v32 = vld [vmem:[#allocation7 + $0x2f8] sm:$0xff] }
  0xe5   :  { %v1846_v39 = vpack.c.bf16 %v1209_v35, %v1207_v58  ;;  %3499 = vst [vmem:[#allocation17_spill] sm:$0xff] %v2525_v32 }
  0xe6   :  { %1845 = vmatpush1.bf16.msra.mxu0 %v1844_v33 }
  0xe7   :  { %536 = vmatmul.mubr.f32.gmra.mrb[54].mxu1 %v2353_v3  ;;  %1847 = vmatprep.subr.bf16.mxu0 %v1846_v39  ;;  %v224_v3 = vlaneseq }
  0xe8   :  { %541 = vmatprep.mubr.f32.mxu1 %v2355_v5 }
  0xe9   :  { %v2412_v5 = vshrl.u32 %v224_v3, 7 }
  0xeb   :  { %542 = vmatmul.mubr.f32.gmra.mrb[56].mxu1 %v2359_v13  ;;  %3494 = vst [vmem:[#allocation12_spill] sm:$0xff] %v2412_v5  ;;  %v3454_v13 = vsub.s32 0, %v2412_v5  ;;  %v238_v35 = vsub.s32 3, %v2412_v5 }
  0xec   :  { %547 = vmatprep.mubr.f32.mxu1 %v2361_v17  ;;  %v2418_v17 = vld [vmem:[%s3449_s2] sm:$0xf] }
  0xed   :  { %v2616_v32 = vrot.slane %v2418_v17, %v238_v35 }
  0xef   :  { %548 = vmatmul.mubr.f32.gmra.mrb[58].mxu1 %v2365_v23  ;;  %v3453_v23 = vsub.s32 1, %v2412_v5  ;;  %3517 = vst [vmem:[#allocation35_spill] sm:$0xff] %v2616_v32 }
  0xf0   :  { %553 = vmatprep.mubr.f32.mxu1 %v2367_v28  ;;  %v2424_v28 = vrot.slane %v2418_v17, %v3454_v13  ;;  %v2551_v13 = vld [vmem:[#allocation7 + $0x2f0] sm:$0xff] }
  0xf1   :  { %3501 = vst [vmem:[#allocation19_spill] sm:$0xff] %v2551_v13 }
  0xf3   :  { %554 = vmatmul.mubr.f32.gmra.mrb[60].mxu1 %v2371_v37  ;;  %v2429_v37 = vrot.slane %v2418_v17, %v3453_v23 }
  0xf4   :  { %559 = vmatprep.mubr.f32.mxu1 %v2373_v40  ;;  %v2431_v40 = vld [vmem:[#allocation7 + $0x200] sm:$0xff] }
  0xf7   :  { %560 = vmatmul.mubr.f32.gmra.mrb[62].mxu1 %v2377_v50  ;;  %v2439_v50 = vld [vmem:[#allocation7 + $0x220] sm:$0xff] }
 0x14e   :  { %v310_v52 = vpop.f32.mrb[0].mxu1 }
 0x14f   :  { %v2450_v53 = vadd.f32 %v310_v52, %v2424_v28  ;;  %v312_v62 = vpop.f32.mrb[1].mxu1 }
 0x150   :  { %v2459_v26 = vadd.f32 %v312_v62, %v2429_v37 }
 0x151   :  { %v566_v54 = vmul.f32 %v2450_v53, %v2450_v53 }
 0x152   :  { %v567_v60 = vmul.f32 %v2459_v26, %v2459_v26  ;;  %v316_v63 = vpop.f32.mrb[2].mxu1 }
 0x153   :  { %v630_v7 = vmul.f32 %v566_v54, %v2450_v53  ;;  %v2493_v8 = vadd.f32 %v316_v63, %v2424_v28  ;;  %v318_v24 = vpop.f32.mrb[3].mxu1 }
 0x154   :  { %v631_v34 = vmul.f32 %v567_v60, %v2459_v26  ;;  %v2507_v19 = vadd.f32 %v318_v24, %v2429_v37  ;;  %v234_v60 = vsub.s32 2, %v2412_v5  ;;  %v2597_v5 = vld [vmem:[#allocation7 + $0x348] sm:$0xff] }
 0x155   :  { %v694_v47 = vmul.f32 0.044715, %v630_v7  ;;  %v570_v25 = vmul.f32 %v2493_v8, %v2493_v8  ;;  %3512 = vst [vmem:[#allocation30_spill] sm:$0xff] %v2597_v5  ;;  %v2666_v5 = vld [vmem:[#allocation7 + $0x3a8] sm:$0xff] }
 0x156   :  { %v571_v55 = vmul.f32 %v2507_v19, %v2507_v19  ;;  %v322_v33 = vpop.f32.mrb[4].mxu1  ;;  %v695_v58 = vmul.f32 0.044715, %v631_v34  ;;  %v2582_v10 = vrot.slane %v2418_v17, %v234_v60  ;;  %v2599_v60 = vld [vmem:[#allocation7 + $0x358] sm:$0xff]  ;;  %3525 = vst [vmem:[#allocation43_spill] sm:$0xff] %v2666_v5 }
 0x157   :  { %v758_v3 = vadd.f32 %v694_v47, %v2450_v53  ;;  %v634_v52 = vmul.f32 %v570_v25, %v2493_v8  ;;  %v2536_v62 = vadd.f32 %v322_v33, %v2424_v28  ;;  %v324_v54 = vpop.f32.mrb[5].mxu1  ;;  %v2547_v47 = vld [vmem:[#allocation7 + $0x2e0] sm:$0xff]  ;;  %3513 = vst [vmem:[#allocation31_spill] sm:$0xff] %v2599_v60  ;;  %v2668_v60 = vld [vmem:[#allocation7 + $0x3b8] sm:$0xff] }
 0x158   :  { %v635_v63 = vmul.f32 %v571_v55, %v2507_v19  ;;  %v2542_v7 = vadd.f32 %v324_v54, %v2429_v37  ;;  %v759_v24 = vadd.f32 %v695_v58, %v2459_v26  ;;  %3500 = vst [vmem:[#allocation18_spill] sm:$0xff] %v2547_v47  ;;  %3507 = vst [vmem:[#allocation25_spill] sm:$0xff] %v2582_v10 }
 0x159   :  { %v822_v25 = vmul.f32 0.7978846, %v758_v3  ;;  %v698_v23 = vmul.f32 0.044715, %v634_v52  ;;  %v574_v33 = vmul.f32 %v2536_v62, %v2536_v62  ;;  %3526 = vst [vmem:[#allocation44_spill] sm:$0xff] %v2668_v60 }
 0x15a   :  { %v699_v55 = vmul.f32 0.044715, %v635_v63  ;;  %v575_v54 = vmul.f32 %v2542_v7, %v2542_v7  ;;  %v328_v39 = vpop.f32.mrb[6].mxu1  ;;  %v823_v58 = vmul.f32 0.7978846, %v759_v24  ;;  %v2567_v24 = vld [vmem:[#allocation7 + $0x308] sm:$0xff] }
 0x15b   :  { %v762_v34 = vadd.f32 %v698_v23, %v2493_v8  ;;  %v638_v3 = vmul.f32 %v574_v33, %v2536_v62  ;;  %v2560_v52 = vadd.f32 %v328_v39, %v2424_v28  ;;  %v330_v30 = vpop.f32.mrb[7].mxu1  ;;  %1982 = vtanh.f32 %v822_v25  ;;  %3503 = vst [vmem:[#allocation21_spill] sm:$0xff] %v2567_v24  ;;  %v2575_v33 = vld [vmem:[#allocation7 + $0x300] sm:$0xff] }
 0x15c   :  { %v763_v49 = vadd.f32 %v699_v55, %v2507_v19  ;;  %v639_v63 = vmul.f32 %v575_v54, %v2542_v7  ;;  %v2565_v20 = vadd.f32 %v330_v30, %v2429_v37  ;;  %1984 = vtanh.f32 %v823_v58  ;;  %3505 = vst [vmem:[#allocation23_spill] sm:$0xff] %v2575_v33  ;;  %v2577_v55 = vld [vmem:[#allocation7 + $0x310] sm:$0xff] }
 0x15d   :  { %3502 = vst [vmem:[#allocation20_spill] sm:$0xff] %v2560_v52  ;;  %v826_v23 = vmul.f32 0.7978846, %v762_v34  ;;  %v702_v27 = vmul.f32 0.044715, %v638_v3  ;;  %v578_v39 = vmul.f32 %v2560_v52, %v2560_v52  ;;  %3506 = vst [vmem:[#allocation24_spill] sm:$0xff] %v2577_v55 }
 0x15e   :  { %v827_v54 = vmul.f32 0.7978846, %v763_v49  ;;  %v703_v30 = vmul.f32 0.044715, %v639_v63  ;;  %v579_v58 = vmul.f32 %v2565_v20, %v2565_v20  ;;  %v334_v9 = vpop.f32.mrb[8].mxu1  ;;  %v2584_v34 = vld [vmem:[#allocation7 + $0x328] sm:$0xff] }
 0x15f   :  { %3508 = vst [vmem:[#allocation26_spill] sm:$0xff] %v2584_v34  ;;  %v2586_v3 = vld [vmem:[#allocation7 + $0x338] sm:$0xff]  ;;  %v766_v25 = vadd.f32 %v702_v27, %v2536_v62  ;;  %v642_v0 = vmul.f32 %v578_v39, %v2560_v52  ;;  %v2593_v49 = vadd.f32 %v334_v9, %v2424_v28  ;;  %v336_v63 = vpop.f32.mrb[9].mxu1  ;;  %1986 = vtanh.f32 %v826_v23  ;;  %v2607_v39 = vld [vmem:[#allocation7 + $0x340] sm:$0xff]  ;;  %v2609_v9 = vld [vmem:[#allocation7 + $0x350] sm:$0xff] }
 0x160   :  { %3509 = vst [vmem:[#allocation27_spill] sm:$0xff] %v2586_v3  ;;  %v767_v10 = vadd.f32 %v703_v30, %v2542_v7  ;;  %v2603_v47 = vadd.f32 %v336_v63, %v2429_v37  ;;  %1988 = vtanh.f32 %v827_v54  ;;  %3514 = vst [vmem:[#allocation32_spill] sm:$0xff] %v2607_v39  ;;  %v2611_v23 = vld [vmem:[#allocation7 + $0x368] sm:$0xff]  ;;  %v2620_v54 = vld [vmem:[#allocation7 + $0x378] sm:$0xff]  ;;  %v643_v21 = vmul.f32 %v579_v58, %v2565_v20 }
 0x161   :  { %3515 = vst [vmem:[#allocation33_spill] sm:$0xff] %v2609_v9  ;;  %3516 = vst [vmem:[#allocation34_spill] sm:$0xff] %v2611_v23  ;;  %v830_v13 = vmul.f32 0.7978846, %v766_v25  ;;  %v582_v31 = vmul.f32 %v2593_v49, %v2593_v49  ;;  %v2622_v63 = vld [vmem:[#allocation7 + $0x360] sm:$0xff]  ;;  %v2624_v27 = vld [vmem:[#allocation7 + $0x370] sm:$0xff] }
 0x162   :  { %3518 = vst [vmem:[#allocation36_spill] sm:$0xff] %v2620_v54  ;;  %3519 = vst [vmem:[#allocation37_spill] sm:$0xff] %v2622_v63  ;;  %v831_v24 = vmul.f32 0.7978846, %v767_v10  ;;  %v706_v36 = vmul.f32 0.044715, %v642_v0  ;;  %v583_v25 = vmul.f32 %v2603_v47, %v2603_v47 }
 0x163   :  { %3520 = vst [vmem:[#allocation38_spill] sm:$0xff] %v2624_v27  ;;  %v340_v22 = vpop.f32.mrb[10].mxu1  ;;  %v2647_v55 = vld [vmem:[#allocation7 + $0x388] sm:$0xff]  ;;  %v646_v32 = vmul.f32 %v582_v31, %v2593_v49  ;;  %v2653_v10 = vld [vmem:[#allocation7 + $0x398] sm:$0xff]  ;;  %v2655_v58 = vld [vmem:[#allocation7 + $0x380] sm:$0xff] }
 0x164   :  { %v2630_v17 = vadd.f32 %v340_v22, %v2424_v28  ;;  %v342_v35 = vpop.f32.mrb[11].mxu1  ;;  %3521 = vst [vmem:[#allocation39_spill] sm:$0xff] %v2647_v55  ;;  %v647_v2 = vmul.f32 %v583_v25, %v2603_v47  ;;  %1990 = vtanh.f32 %v831_v24  ;;  %3522 = vst [vmem:[#allocation40_spill] sm:$0xff] %v2653_v10  ;;  %v2657_v39 = vld [vmem:[#allocation7 + $0x390] sm:$0xff]  ;;  %v770_v33 = vadd.f32 %v706_v36, %v2560_v52 }
 0x165   :  { %v2639_v0 = vadd.f32 %v342_v35, %v2429_v37  ;;  %v1983_v30 = vpop.eup %1982  ;;  %3523 = vst [vmem:[#allocation41_spill] sm:$0xff] %v2655_v58  ;;  %3524 = vst [vmem:[#allocation42_spill] sm:$0xff] %v2657_v39  ;;  %v707_v63 = vmul.f32 0.044715, %v643_v21  ;;  %1992 = vtanh.f32 %v830_v13  ;;  %v710_v56 = vmul.f32 0.044715, %v646_v32 }
 0x166   :  { %v586_v35 = vmul.f32 %v2630_v17, %v2630_v17  ;;  %v1985_v22 = vpop.eup %1984  ;;  %v346_v27 = vpop.f32.mrb[12].mxu1  ;;  %v950_v23 = vmul.f32 0.5, %v1983_v30  ;;  %v2679_v52 = vmul.f32 0.7978846, %v770_v33 }
 0x167   :  { %v587_v25 = vmul.f32 %v2639_v0, %v2639_v0  ;;  %v2664_v24 = vadd.f32 %v346_v27, %v2424_v28  ;;  %v348_v54 = vpop.f32.mrb[13].mxu1  ;;  %v951_v9 = vmul.f32 0.5, %v1985_v22  ;;  %v711_v27 = vmul.f32 0.044715, %v647_v2 }
 0x168   :  { %v650_v31 = vmul.f32 %v586_v35, %v2630_v17  ;;  %v2671_v36 = vadd.f32 %v348_v54, %v2429_v37  ;;  %v1014_v21 = vadd.f32 0.5, %v950_v23  ;;  %v771_v54 = vadd.f32 %v707_v63, %v2565_v20 }
 0x169   :  { %v1987_v35 = vpop.eup %1986  ;;  %v590_v22 = vmul.f32 %v2664_v24, %v2664_v24  ;;  %v1015_v34 = vadd.f32 0.5, %v951_v9  ;;  %v651_v32 = vmul.f32 %v587_v25, %v2639_v0  ;;  %v774_v10 = vadd.f32 %v710_v56, %v2593_v49 }
 0x16a   :  { %v1989_v3 = vpop.eup %1988  ;;  %v591_v23 = vmul.f32 %v2671_v36, %v2671_v36  ;;  %v352_v14 = vpop.f32.mrb[14].mxu1  ;;  %v714_v30 = vmul.f32 0.044715, %v650_v31  ;;  %v1078_v39 = vmul.f32 %v1014_v21, %v2450_v53  ;;  %v775_v31 = vadd.f32 %v711_v27, %v2603_v47 }
 0x16b   :  { %v2688_v2 = vadd.f32 %v352_v14, %v2424_v28  ;;  %v354_v58 = vpop.f32.mrb[15].mxu1  ;;  %v1079_v9 = vmul.f32 %v1015_v34, %v2459_v26  ;;  %v654_v33 = vmul.f32 %v590_v22, %v2664_v24  ;;  %v955_v55 = vmul.f32 0.5, %v1989_v3 }
 0x16c   :  { %v2693_v63 = vadd.f32 %v354_v58, %v2429_v37  ;;  %v655_v25 = vmul.f32 %v591_v23, %v2671_v36  ;;  %v954_v14 = vmul.f32 0.5, %v1987_v35  ;;  %v835_v13 = vmul.f32 0.7978846, %v771_v54 }
 0x16d   :  { %1346 = vmatprep.mubr.f32.mxu0 %v1079_v9  ;;  %v594_v26 = vmul.f32 %v2688_v2, %v2688_v2  ;;  %v1019_v22 = vadd.f32 0.5, %v955_v55  ;;  %v778_v3 = vadd.f32 %v714_v30, %v2630_v17  ;;  %v715_v56 = vmul.f32 0.044715, %v651_v32 }
 0x16e   :  { %v595_v34 = vmul.f32 %v2693_v63, %v2693_v63  ;;  %v358_v58 = vpop.f32.mrb[16].mxu1  ;;  %1347 = vmatmul.mubr.f32.vlgmr.msra.gmra.mrb[0].mxu0 %v1078_v39  ;;  %v1991_v53 = vpop.eup %1990  ;;  %v3527_v35 = vpack.c.bf16 %v2433_v44, %v2431_v40  ;;  %v1018_v54 = vadd.f32 0.5, %v954_v14  ;;  %v718_v9 = vmul.f32 0.044715, %v654_v33 }
 0x16f   :  { %v2705_v21 = vadd.f32 %v358_v58, %v2424_v28  ;;  %v360_v27 = vpop.f32.mrb[17].mxu1  ;;  %v1993_v23 = vpop.eup %1992  ;;  %v1083_v55 = vmul.f32 %v1019_v22, %v2507_v19  ;;  %v3528_v30 = vpack.c.bf16 %v2437_v48, %v2435_v45  ;;  %v838_v32 = vmul.f32 0.7978846, %v774_v10 }
 0x170   :  { %1849 = vmatpush1.bf16.msra.mxu0 %v3527_v35  ;;  %v659_v5 = vmul.f32 %v595_v34, %v2693_v63  ;;  %v2712_v39 = vadd.f32 %v360_v27, %v2429_v37  ;;  %v839_v58 = vmul.f32 0.7978846, %v775_v31  ;;  %v719_v60 = vmul.f32 0.044715, %v655_v25 }
 0x171   :  { %1851 = vmatprep.subr.bf16.mxu0 %v3528_v30  ;;  %v1082_v40 = vmul.f32 %v1018_v54, %v2493_v8  ;;  %v658_v44 = vmul.f32 %v594_v26, %v2688_v2  ;;  %v598_v33 = vmul.f32 %v2705_v21, %v2705_v21  ;;  %1352 = vmatprep.mubr.f32.mxu0 %v1083_v55  ;;  %v959_v19 = vmul.f32 0.5, %v1991_v53 }
 0x172   :  { %v599_v14 = vmul.f32 %v2712_v39, %v2712_v39  ;;  %v364_v34 = vpop.f32.mrb[18].mxu1  ;;  %v779_v22 = vadd.f32 %v715_v56, %v2639_v0  ;;  %v723_v45 = vmul.f32 0.044715, %v659_v5  ;;  %v958_v8 = vmul.f32 0.5, %v1993_v23 }
 0x173   :  { %v2726_v48 = vadd.f32 %v364_v34, %v2424_v28  ;;  %1353 = vmatmul.mubr.f32.gmra.mrb[2].mxu0 %v1082_v40  ;;  %v366_v10 = vpop.f32.mrb[19].mxu1  ;;  %v842_v31 = vmul.f32 0.7978846, %v778_v3  ;;  %v782_v25 = vadd.f32 %v718_v9, %v2664_v24  ;;  %v3529_v27 = vpack.c.bf16 %v2441_v51, %v2439_v50 }
 0x174   :  { %v2730_v26 = vadd.f32 %v366_v10, %v2429_v37  ;;  %v1023_v53 = vadd.f32 0.5, %v959_v19  ;;  %v783_v56 = vadd.f32 %v719_v60, %v2671_v36  ;;  %v663_v5 = vmul.f32 %v599_v14, %v2712_v39 }
 0x175   :  { %1853 = vmatpush1.bf16.msra.mxu0 %v3529_v27  ;;  %v602_v35 = vmul.f32 %v2726_v48, %v2726_v48  ;;  %v1022_v54 = vadd.f32 0.5, %v958_v8  ;;  %v3530_v3 = vpack.c.bf16 %v2445_v38, %v2443_v41  ;;  %v722_v23 = vmul.f32 0.044715, %v658_v44 }
 0x176   :  { %v662_v9 = vmul.f32 %v598_v33, %v2705_v21  ;;  %v603_v50 = vmul.f32 %v2730_v26, %v2730_v26  ;;  %v1087_v51 = vmul.f32 %v1023_v53, %v2542_v7  ;;  %v370_v55 = vpop.f32.mrb[20].mxu1  ;;  %v787_v60 = vadd.f32 %v723_v45, %v2693_v63 }
 0x177   :  { %1855 = vmatprep.subr.bf16.mxu0 %v3530_v3  ;;  %v666_v30 = vmul.f32 %v602_v35, %v2726_v48  ;;  %v2749_v40 = vadd.f32 %v370_v55, %v2424_v28  ;;  %v1086_v14 = vmul.f32 %v1022_v54, %v2536_v62  ;;  %v372_v41 = vpop.f32.mrb[21].mxu1  ;;  %v843_v38 = vmul.f32 0.7978846, %v779_v22  ;;  %v2784_v35 = vld [vmem:[#allocation7 + $0x3d8] sm:$0xff]  ;;  %v2799_v55 = vld [vmem:[#allocation7 + $0x3d0] sm:$0xff] }
 0x178   :  { %v846_v44 = vmul.f32 0.7978846, %v782_v25  ;;  %1358 = vmatprep.mubr.f32.mxu0 %v1087_v51  ;;  %v2753_v33 = vadd.f32 %v372_v41, %v2429_v37  ;;  %v3531_v7 = vpack.c.bf16 %v2452_v1, %v2447_v42  ;;  %1994 = vtanh.f32 %v835_v13  ;;  %v2766_v1 = vld [vmem:[#allocation7 + $0x3a0] sm:$0xff]  ;;  %v2768_v13 = vld [vmem:[#allocation7 + $0x3b0] sm:$0xff] }
 0x179   :  { %v847_v34 = vmul.f32 0.7978846, %v783_v56  ;;  %v727_v19 = vmul.f32 0.044715, %v663_v5  ;;  %v606_v45 = vmul.f32 %v2749_v40, %v2749_v40  ;;  %1359 = vmatmul.mubr.f32.gmra.mrb[4].mxu0 %v1086_v14  ;;  %1996 = vtanh.f32 %v2679_v52  ;;  %v2782_v5 = vld [vmem:[#allocation7 + $0x3c8] sm:$0xff]  ;;  %v2811_v41 = vld [vmem:[#allocation7 + $0x3e0] sm:$0xff] }
 0x17a   :  { %1857 = vmatpush1.bf16.msra.mxu0 %v3531_v7  ;;  %v3532_v62 = vpack.c.bf16 %v2456_v15, %v2454_v12  ;;  %v786_v22 = vadd.f32 %v722_v23, %v2688_v2  ;;  %v726_v10 = vmul.f32 0.044715, %v662_v9  ;;  %v667_v8 = vmul.f32 %v603_v50, %v2730_v26  ;;  %v376_v42 = vpop.f32.mrb[22].mxu1  ;;  %3536 = vst [vmem:[#allocation46_spill] sm:$0xff] %v2811_v41  ;;  %v3547_v23 = vld [vmem:[#allocation16_spill] sm:$0xff] }
 0x17b   :  { %1998 = vtanh.f32 %v839_v58  ;;  %v851_v25 = vmul.f32 0.7978846, %v787_v60  ;;  %v730_v27 = vmul.f32 0.044715, %v666_v30  ;;  %v2771_v53 = vadd.f32 %v376_v42, %v2424_v28  ;;  %v378_v52 = vpop.f32.mrb[23].mxu1  ;;  %v2801_v60 = vld [vmem:[#allocation7 + $0x3e8] sm:$0xff] }
 0x17c   :  { %1859 = vmatprep.subr.bf16.mxu0 %v3532_v62  ;;  %2000 = vtanh.f32 %v838_v32  ;;  %v670_v12 = vmul.f32 %v606_v45, %v2749_v40  ;;  %v607_v15 = vmul.f32 %v2753_v33, %v2753_v33  ;;  %v2777_v56 = vadd.f32 %v378_v52, %v2429_v37 }
 0x17d   :  { %3533 = vst [vmem:[#allocation45_spill] sm:$0xff] %v2771_v53  ;;  %v3534_v58 = vpack.c.bf16 %v2463_v43, %v2461_v29  ;;  %2002 = vtanh.f32 %v843_v38  ;;  %v791_v54 = vadd.f32 %v727_v19, %v2712_v39  ;;  %v610_v32 = vmul.f32 %v2771_v53, %v2771_v53  ;;  %v2794_v29 = vld [vmem:[#allocation7 + $0x3c0] sm:$0xff]  ;;  %v2813_v38 = vld [vmem:[#allocation7 + $0x3f0] sm:$0xff] }
 0x17e   :  { %v3535_v3 = vpack.c.bf16 %v2471_v59, %v2465_v46  ;;  %2004 = vtanh.f32 %v842_v31  ;;  %v790_v43 = vadd.f32 %v726_v10, %v2705_v21  ;;  %v731_v9 = vmul.f32 0.044715, %v667_v8  ;;  %v382_v51 = vpop.f32.mrb[24].mxu1  ;;  %v2803_v46 = vld [vmem:[#allocation7 + $0x3f8] sm:$0xff] }
 0x17f   :  { %1861 = vmatpush1.bf16.msra.mxu0 %v3534_v58  ;;  %v611_v50 = vmul.f32 %v2777_v56, %v2777_v56  ;;  %2006 = vtanh.f32 %v847_v34  ;;  %v794_v59 = vadd.f32 %v730_v27, %v2726_v48  ;;  %v2807_v31 = vadd.f32 %v382_v51, %v2424_v28  ;;  %v384_v30 = vpop.f32.mrb[25].mxu1 }
 0x180   :  { %1863 = vmatprep.subr.bf16.mxu0 %v3535_v3  ;;  %2008 = vtanh.f32 %v846_v44  ;;  %v850_v7 = vmul.f32 0.7978846, %v786_v22  ;;  %v734_v34 = vmul.f32 0.044715, %v670_v12  ;;  %v671_v19 = vmul.f32 %v607_v15, %v2753_v33 }
 0x181   :  { %v3537_v45 = vpack.c.bf16 %v2475_v61, %v2473_v57  ;;  %2010 = vtanh.f32 %v851_v25  ;;  %v855_v62 = vmul.f32 0.7978846, %v791_v54  ;;  %v674_v10 = vmul.f32 %v610_v32, %v2771_v53 }
 0x182   :  { %v3538_v44 = vpack.c.bf16 %v2487_v16, %v2485_v4  ;;  %v1995_v42 = vpop.eup %1994  ;;  %v2827_v27 = vmul.f32 0.7978846, %v790_v43  ;;  %v795_v57 = vadd.f32 %v731_v9, %v2730_v26  ;;  %v675_v61 = vmul.f32 %v611_v50, %v2777_v56  ;;  %v388_v25 = vpop.f32.mrb[26].mxu1 }
 0x183   :  { %1865 = vmatpush1.bf16.msra.mxu0 %v3537_v45  ;;  %v1997_v12 = vpop.eup %1996  ;;  %v2833_v4 = vmul.f32 0.7978846, %v794_v59  ;;  %v963_v16 = vmul.f32 0.5, %v1995_v42  ;;  %v2836_v15 = vadd.f32 %v384_v30, %v2429_v37  ;;  %v2839_v58 = vadd.f32 %v388_v25, %v2424_v28  ;;  %v390_v54 = vpop.f32.mrb[27].mxu1  ;;  %v3540_v30 = vld [vmem:[#allocation13_spill] sm:$0xff] }
 0x184   :  { %1867 = vmatprep.subr.bf16.mxu0 %v3538_v44  ;;  %v798_v3 = vadd.f32 %v734_v34, %v2749_v40  ;;  %v735_v43 = vmul.f32 0.044715, %v671_v19  ;;  %v962_v9 = vmul.f32 0.5, %v1997_v12  ;;  %v3539_v50 = vpack.c.bf16 %v2499_v11, %v2489_v6 }
 0x185   :  { %v1999_v32 = vpop.eup %1998  ;;  %2012 = vtanh.f32 %v850_v7  ;;  %v1027_v59 = vadd.f32 0.5, %v963_v16  ;;  %v738_v45 = vmul.f32 0.044715, %v674_v10  ;;  %v3541_v42 = vpack.c.bf16 %v2503_v18, %v3540_v30 }
 0x186   :  { %v2001_v51 = vpop.eup %2000  ;;  %v967_v44 = vmul.f32 0.5, %v1999_v32  ;;  %2014 = vtanh.f32 %v855_v62  ;;  %v1026_v52 = vadd.f32 0.5, %v962_v9  ;;  %v739_v22 = vmul.f32 0.044715, %v675_v61  ;;  %v394_v16 = vpop.f32.mrb[28].mxu1  ;;  %v3542_v9 = vld [vmem:[#allocation20_spill] sm:$0xff] }
 0x187   :  { %1869 = vmatpush1.bf16.msra.mxu0 %v3539_v50  ;;  %v2003_v25 = vpop.eup %2002  ;;  %v614_v34 = vmul.f32 %v2807_v31, %v2807_v31  ;;  %v966_v19 = vmul.f32 0.5, %v2001_v51  ;;  %v1091_v6 = vmul.f32 %v1027_v59, %v2565_v20  ;;  %v615_v7 = vmul.f32 %v2836_v15, %v2836_v15  ;;  %v396_v30 = vpop.f32.mrb[29].mxu1  ;;  %v3544_v51 = vld [vmem:[#allocation14_spill] sm:$0xff] }
 0x188   :  { %1871 = vmatprep.subr.bf16.mxu0 %v3541_v42  ;;  %v2005_v12 = vpop.eup %2004  ;;  %v1031_v11 = vadd.f32 0.5, %v967_v44  ;;  %v971_v10 = vmul.f32 0.5, %v2003_v25  ;;  %v2853_v18 = vmul.f32 0.7978846, %v795_v57  ;;  %v799_v62 = vadd.f32 %v735_v43, %v2753_v33  ;;  %v3543_v42 = vld [vmem:[#allocation15_spill] sm:$0xff]  ;;  %v3546_v57 = vld [vmem:[#allocation17_spill] sm:$0xff] }
 0x189   :  { %v2007_v32 = vpop.eup %2006  ;;  %v1090_v61 = vmul.f32 %v1026_v52, %v3542_v9  ;;  %v1030_v50 = vadd.f32 0.5, %v966_v19  ;;  %v3545_v8 = vpack.c.bf16 %v3543_v42, %v3544_v51  ;;  %1364 = vmatprep.mubr.f32.mxu0 %v1091_v6  ;;  %v970_v25 = vmul.f32 0.5, %v2005_v12 }
 0x18a   :  { %v2009_v20 = vpop.eup %2008  ;;  %v1095_v59 = vmul.f32 %v1031_v11, %v2603_v47  ;;  %v1035_v44 = vadd.f32 0.5, %v971_v10  ;;  %v2862_v14 = vadd.f32 %v390_v54, %v2429_v37  ;;  %v3548_v43 = vpack.c.bf16 %v3546_v57, %v3547_v23  ;;  %v400_v47 = vpop.f32.mrb[30].mxu1 }
 0x18b   :  { %1873 = vmatpush1.bf16.msra.mxu0 %v3545_v8  ;;  %v2011_v52 = vpop.eup %2010  ;;  %v2867_v19 = vmul.f32 0.7978846, %v798_v3  ;;  %v802_v9 = vadd.f32 %v738_v45, %v2771_v53  ;;  %v803_v8 = vadd.f32 %v739_v22, %v2777_v56  ;;  %v678_v6 = vmul.f32 %v614_v34, %v2807_v31  ;;  %v402_v10 = vpop.f32.mrb[31].mxu1  ;;  %v3550_v22 = vld [vmem:[#allocation19_spill] sm:$0xff]  ;;  %v3551_v34 = vld [vmem:[#allocation18_spill] sm:$0xff] }
 0x18c   :  { %1875 = vmatprep.subr.bf16.mxu0 %v3548_v43  ;;  %1365 = vmatmul.mubr.f32.gmra.mrb[6].mxu0 %v1090_v61  ;;  %v679_v12 = vmul.f32 %v615_v7, %v2836_v15  ;;  %v1099_v54 = vmul.f32 %v1035_v44, %v2639_v0  ;;  %v975_v11 = vmul.f32 0.5, %v2007_v32  ;;  %v2875_v23 = vadd.f32 %v394_v16, %v2424_v28  ;;  %v3554_v44 = vld [vmem:[#allocation21_spill] sm:$0xff]  ;;  %v3558_v53 = vld [vmem:[#allocation23_spill] sm:$0xff] }
 0x18d   :  { %1370 = vmatprep.mubr.f32.mxu0 %v1095_v59  ;;  %v1094_v3 = vmul.f32 %v1030_v50, %v2593_v49  ;;  %v1034_v42 = vadd.f32 0.5, %v970_v25  ;;  %v974_v45 = vmul.f32 0.5, %v2009_v20  ;;  %v2879_v61 = vadd.f32 %v396_v30, %v2429_v37  ;;  %v3553_v59 = vld [vmem:[#allocation22_spill] sm:$0xff] }
 0x18e   :  { %3549 = vst [vmem:[#allocation13_spill] sm:$0xff] %v2875_v23  ;;  %v3552_v51 = vpack.c.bf16 %v3550_v22, %v3551_v34  ;;  %v618_v7 = vmul.f32 %v2839_v58, %v2839_v58  ;;  %v619_v0 = vmul.f32 %v2862_v14, %v2862_v14  ;;  %v1039_v16 = vadd.f32 0.5, %v975_v11  ;;  %v471_v43 = vpop.f32.mrb[32].mxu1 }
 0x18f   :  { %v979_v32 = vmul.f32 0.5, %v2011_v52  ;;  %v3555_v49 = vpack.c.bf16 %v3553_v59, %v3554_v44  ;;  %v2013_v50 = vpop.eup %2012  ;;  %v2891_v20 = vmul.f32 0.7978846, %v799_v62  ;;  %v2893_v30 = vmul.f32 0.7978846, %v802_v9  ;;  %v473_v62 = vpop.f32.mrb[33].mxu1 }
 0x190   :  { %1877 = vmatpush1.bf16.msra.mxu0 %v3552_v51  ;;  %v622_v25 = vmul.f32 %v2875_v23, %v2875_v23  ;;  %v623_v57 = vmul.f32 %v2879_v61, %v2879_v61  ;;  %v2015_v22 = vpop.eup %2014  ;;  %v1103_v52 = vmul.f32 %v1039_v16, %v2671_v36  ;;  %v1038_v11 = vadd.f32 0.5, %v974_v45  ;;  %v3561_v16 = vld [vmem:[#allocation26_spill] sm:$0xff] }
 0x191   :  { %1879 = vmatprep.subr.bf16.mxu0 %v3555_v49  ;;  %1371 = vmatmul.mubr.f32.gmra.mrb[8].mxu0 %v1094_v3  ;;  %v1043_v34 = vadd.f32 0.5, %v979_v32  ;;  %v2901_v51 = vadd.f32 %v400_v47, %v2424_v28  ;;  %v2903_v9 = vmul.f32 0.7978846, %v803_v8  ;;  %v742_v3 = vmul.f32 0.044715, %v678_v6  ;;  %v3557_v49 = vld [vmem:[#allocation24_spill] sm:$0xff] }
 0x192   :  { %1376 = vmatprep.mubr.f32.mxu0 %v1099_v54  ;;  %v743_v59 = vmul.f32 0.044715, %v679_v12  ;;  %v1098_v44 = vmul.f32 %v1034_v42, %v2630_v17  ;;  %v3559_v41 = vpack.c.bf16 %v3557_v49, %v3558_v53  ;;  %v682_v54 = vmul.f32 %v618_v7, %v2839_v58  ;;  %v3560_v47 = vld [vmem:[#allocation27_spill] sm:$0xff]  ;;  %v477_v12 = vpop.f32.mrb[34].mxu1  ;;  %v3564_v32 = vld [vmem:[#allocation25_spill] sm:$0xff] }
 0x193   :  { %3556 = vst [vmem:[#allocation20_spill] sm:$0xff] %v2901_v51  ;;  %v683_v36 = vmul.f32 %v619_v0, %v2862_v14  ;;  %v626_v45 = vmul.f32 %v2901_v51, %v2901_v51  ;;  %v978_v28 = vmul.f32 0.5, %v2013_v50  ;;  %v3562_v8 = vpack.c.bf16 %v3560_v47, %v3561_v16  ;;  %v3571_v16 = vld [vmem:[#allocation35_spill] sm:$0xff] }
 0x194   :  { %1881 = vmatpush1.bf16.msra.mxu0 %v3559_v41  ;;  %v686_v6 = vmul.f32 %v622_v25, %v2875_v23  ;;  %v687_v17 = vmul.f32 %v623_v57, %v2879_v61  ;;  %v2919_v53 = vadd.f32 %v402_v10, %v2429_v37  ;;  %v983_v41 = vmul.f32 0.5, %v2015_v22  ;;  %v3565_v37 = vld [vmem:[#allocation29_spill] sm:$0xff]  ;;  %v3566_v10 = vld [vmem:[#allocation28_spill] sm:$0xff] }
 0x195   :  { %1883 = vmatprep.subr.bf16.mxu0 %v3562_v8  ;;  %1377 = vmatmul.mubr.f32.gmra.mrb[10].mxu0 %v1098_v44  ;;  %v1102_v42 = vmul.f32 %v1038_v11, %v2664_v24  ;;  %v1107_v7 = vmul.f32 %v1043_v34, %v2693_v63  ;;  %v690_v0 = vmul.f32 %v626_v45, %v2901_v51  ;;  %v479_v44 = vpop.f32.mrb[35].mxu1  ;;  %v1042_v49 = vadd.f32 0.5, %v978_v28  ;;  %v3568_v11 = vld [vmem:[#allocation31_spill] sm:$0xff]  ;;  %v3569_v34 = vld [vmem:[#allocation30_spill] sm:$0xff] }
 0x196   :  { %3563 = vst [vmem:[#allocation15_spill] sm:$0xff] %v2919_v53  ;;  %1382 = vmatprep.mubr.f32.mxu0 %v1103_v52  ;;  %v2925_v50 = vadd.f32 %v471_v43, %v3564_v32  ;;  %v627_v25 = vmul.f32 %v2919_v53, %v2919_v53  ;;  %v1047_v57 = vadd.f32 0.5, %v983_v41  ;;  %2016 = vtanh.f32 %v2827_v27  ;;  %v483_v41 = vpop.f32.mrb[36].mxu1 }
 0x197   :  { %v3567_v22 = vpack.c.bf16 %v3565_v37, %v3566_v10  ;;  %v806_v24 = vadd.f32 %v742_v3, %v2807_v31  ;;  %v746_v63 = vmul.f32 0.044715, %v682_v54  ;;  %v747_v52 = vmul.f32 0.044715, %v683_v36  ;;  %v485_v37 = vpop.f32.mrb[37].mxu1 }
 0x198   :  { %v568_v43 = vmul.f32 %v2925_v50, %v2925_v50  ;;  %v3570_v45 = vpack.c.bf16 %v3568_v11, %v3569_v34  ;;  %v750_v28 = vmul.f32 0.044715, %v686_v6  ;;  %v751_v47 = vmul.f32 0.044715, %v687_v17  ;;  %v3572_v17 = vld [vmem:[#allocation33_spill] sm:$0xff] }
 0x199   :  { %1885 = vmatpush1.bf16.msra.mxu0 %v3567_v22  ;;  %v691_v27 = vmul.f32 %v627_v25, %v2919_v53  ;;  %v2941_v8 = vadd.f32 %v473_v62, %v3571_v16  ;;  %v754_v3 = vmul.f32 0.044715, %v690_v0  ;;  %v1111_v54 = vmul.f32 %v1047_v57, %v2712_v39 }
 0x19a   :  { %1887 = vmatprep.subr.bf16.mxu0 %v3570_v45  ;;  %1383 = vmatmul.mubr.f32.gmra.mrb[12].mxu0 %v1102_v42  ;;  %v632_v36 = vmul.f32 %v568_v43, %v2925_v50  ;;  %2018 = vtanh.f32 %v2853_v18  ;;  %v1106_v10 = vmul.f32 %v1042_v49, %v2688_v2  ;;  %v2948_v6 = vadd.f32 %v477_v12, %v3564_v32  ;;  %v3573_v42 = vld [vmem:[#allocation32_spill] sm:$0xff]  ;;  %v3576_v49 = vld [vmem:[#allocation34_spill] sm:$0xff]  ;;  %v489_v22 = vpop.f32.mrb[38].mxu1 }
 0x19b   :  { %1388 = vmatprep.mubr.f32.mxu0 %v1107_v7  ;;  %2020 = vtanh.f32 %v2833_v4  ;;  %v2952_v62 = vadd.f32 %v479_v44, %v3571_v16  ;;  %v3574_v7 = vpack.c.bf16 %v3572_v17, %v3573_v42  ;;  %v807_v39 = vadd.f32 %v743_v59, %v2836_v15  ;;  %v3575_v2 = vld [vmem:[#allocation36_spill] sm:$0xff]  ;;  %v3578_v45 = vld [vmem:[#allocation38_spill] sm:$0xff] }
 0x19c   :  { %v810_v0 = vadd.f32 %v746_v63, %v2839_v58  ;;  %v696_v18 = vmul.f32 0.044715, %v632_v36  ;;  %2022 = vtanh.f32 %v2891_v20  ;;  %v3577_v12 = vpack.c.bf16 %v3575_v2, %v3576_v49 }
 0x19d   :  { %1889 = vmatpush1.bf16.msra.mxu0 %v3574_v7  ;;  %v2963_v25 = vmul.f32 0.7978846, %v806_v24  ;;  %v811_v4 = vadd.f32 %v747_v52, %v2862_v14  ;;  %v755_v44 = vmul.f32 0.044715, %v691_v27  ;;  %v569_v57 = vmul.f32 %v2941_v8, %v2941_v8  ;;  %v491_v24 = vpop.f32.mrb[39].mxu1 }
 0x19e   :  { %1891 = vmatprep.subr.bf16.mxu0 %v3577_v12  ;;  %1389 = vmatmul.mubr.f32.gmra.mrb[14].mxu0 %v1106_v10  ;;  %v814_v59 = vadd.f32 %v750_v28, %v2875_v23  ;;  %v760_v63 = vadd.f32 %v696_v18, %v2925_v50  ;;  %v2971_v20 = vadd.f32 %v483_v41, %v3564_v32  ;;  %2024 = vtanh.f32 %v2867_v19  ;;  %v3579_v28 = vld [vmem:[#allocation37_spill] sm:$0xff] }
 0x19f   :  { %1394 = vmatprep.mubr.f32.mxu0 %v1111_v54  ;;  %v815_v43 = vadd.f32 %v751_v47, %v2879_v61  ;;  %v818_v52 = vadd.f32 %v754_v3, %v2901_v51  ;;  %v572_v11 = vmul.f32 %v2948_v6, %v2948_v6  ;;  %v573_v34 = vmul.f32 %v2952_v62, %v2952_v62  ;;  %v3581_v47 = vld [vmem:[#allocation40_spill] sm:$0xff]  ;;  %v3582_v3 = vld [vmem:[#allocation39_spill] sm:$0xff] }
 0x1a0   :  { %v3580_v27 = vpack.c.bf16 %v3578_v45, %v3579_v28  ;;  %v871_v54 = vmul.f32 0.7978846, %v807_v39  ;;  %v2983_v41 = vmul.f32 0.7978846, %v810_v0  ;;  %v2986_v19 = vadd.f32 %v485_v37, %v3571_v16  ;;  %v2017_v10 = vpop.eup %2016  ;;  %v495_v39 = vpop.f32.mrb[40].mxu1 }
 0x1a1   :  { %2026 = vtanh.f32 %v2903_v9  ;;  %v3583_v36 = vpack.c.bf16 %v3581_v47, %v3582_v3  ;;  %v819_v17 = vadd.f32 %v755_v44, %v2919_v53  ;;  %v824_v42 = vmul.f32 0.7978846, %v760_v63  ;;  %v497_v49 = vpop.f32.mrb[41].mxu1  ;;  %v3584_v63 = vld [vmem:[#allocation42_spill] sm:$0xff] }
 0x1a2   :  { %1893 = vmatpush1.bf16.msra.mxu0 %v3580_v27  ;;  %v633_v7 = vmul.f32 %v569_v57, %v2941_v8  ;;  %v2995_v18 = vadd.f32 %v489_v22, %v3564_v32  ;;  %v875_v0 = vmul.f32 0.7978846, %v811_v4  ;;  %v2997_v2 = vmul.f32 0.7978846, %v814_v59  ;;  %v3585_v22 = vld [vmem:[#allocation41_spill] sm:$0xff] }
 0x1a3   :  { %1895 = vmatprep.subr.bf16.mxu0 %v3583_v36  ;;  %v982_v37 = vmul.f32 0.5, %v2017_v10  ;;  %v576_v9 = vmul.f32 %v2971_v20, %v2971_v20  ;;  %v3001_v12 = vmul.f32 0.7978846, %v815_v43  ;;  %v3003_v45 = vmul.f32 0.7978846, %v818_v52  ;;  %v3587_v43 = vld [vmem:[#allocation44_spill] sm:$0xff] }
 0x1a4   :  { %v636_v44 = vmul.f32 %v572_v11, %v2948_v6  ;;  %v637_v57 = vmul.f32 %v573_v34, %v2952_v62  ;;  %v3586_v28 = vpack.c.bf16 %v3584_v63, %v3585_v22  ;;  %v2019_v4 = vpop.eup %2018  ;;  %v577_v27 = vmul.f32 %v2986_v19, %v2986_v19  ;;  %v3588_v52 = vld [vmem:[#allocation43_spill] sm:$0xff]  ;;  %v501_v63 = vpop.f32.mrb[42].mxu1 }
 0x1a5   :  { %v1046_v59 = vadd.f32 0.5, %v982_v37  ;;  %v580_v47 = vmul.f32 %v2995_v18, %v2995_v18  ;;  %2028 = vtanh.f32 %v2893_v30  ;;  %v3589_v3 = vpack.c.bf16 %v3587_v43, %v3588_v52  ;;  %v2021_v11 = vpop.eup %2020  ;;  %v503_v30 = vpop.f32.mrb[43].mxu1 }
 0x1a6   :  { %1897 = vmatpush1.bf16.msra.mxu0 %v3586_v28  ;;  %v3018_v34 = vmul.f32 0.7978846, %v819_v17  ;;  %2030 = vtanh.f32 %v824_v42  ;;  %v697_v36 = vmul.f32 0.044715, %v633_v7  ;;  %v987_v10 = vmul.f32 0.5, %v2019_v4  ;;  %v2023_v37 = vpop.eup %2022 }
 0x1a7   :  { %1899 = vmatprep.subr.bf16.mxu0 %v3589_v3  ;;  %v1110_v22 = vmul.f32 %v1046_v59, %v2705_v21  ;;  %v986_v28 = vmul.f32 0.5, %v2021_v11  ;;  %v640_v51 = vmul.f32 %v576_v9, %v2971_v20  ;;  %v3023_v53 = vadd.f32 %v491_v24, %v3571_v16 }
 0x1a8   :  { %v1051_v23 = vadd.f32 0.5, %v987_v10  ;;  %v700_v43 = vmul.f32 0.044715, %v636_v44  ;;  %v701_v52 = vmul.f32 0.044715, %v637_v57  ;;  %v991_v3 = vmul.f32 0.5, %v2023_v37  ;;  %v2025_v42 = vpop.eup %2024 }
 0x1a9   :  { %v3590_v17 = vpack.c.bf16 %v2768_v13, %v2766_v1  ;;  %1395 = vmatmul.mubr.f32.gmra.mrb[16].mxu0 %v1110_v22  ;;  %v1050_v7 = vadd.f32 0.5, %v986_v28  ;;  %v641_v21 = vmul.f32 %v577_v27, %v2986_v19  ;;  %v644_v4 = vmul.f32 %v580_v47, %v2995_v18  ;;  %v507_v13 = vpop.f32.mrb[44].mxu1 }
 0x1aa   :  { %2032 = vtanh.f32 %v871_v54  ;;  %v3591_v24 = vpack.c.bf16 %v2784_v35, %v2782_v5  ;;  %v1115_v9 = vmul.f32 %v1051_v23, %v2730_v26  ;;  %v1055_v44 = vadd.f32 0.5, %v991_v3  ;;  %v3039_v54 = vpop.f32.mrb[45].mxu1 }
 0x1ab   :  { %1901 = vmatpush1.bf16.msra.mxu0 %v3590_v17  ;;  %v990_v57 = vmul.f32 0.5, %v2025_v42  ;;  %v581_v1 = vmul.f32 %v3023_v53, %v3023_v53  ;;  %v2027_v59 = vpop.eup %2026  ;;  %v761_v11 = vadd.f32 %v697_v36, %v2941_v8  ;;  %v1114_v27 = vmul.f32 %v1050_v7, %v2726_v48  ;;  %v3594_v42 = vld [vmem:[#allocation46_spill] sm:$0xff] }
 0x1ac   :  { %1903 = vmatprep.subr.bf16.mxu0 %v3591_v24  ;;  %v704_v10 = vmul.f32 0.044715, %v640_v51  ;;  %2034 = vtanh.f32 %v2963_v25  ;;  %1400 = vmatprep.mubr.f32.mxu0 %v1115_v9  ;;  %v1119_v5 = vmul.f32 %v1055_v44, %v2753_v33  ;;  %v995_v35 = vmul.f32 0.5, %v2027_v59 }
 0x1ad   :  { %v1054_v26 = vadd.f32 0.5, %v990_v57  ;;  %v3043_v23 = vadd.f32 %v495_v39, %v3564_v32  ;;  %v3592_v47 = vpack.c.bf16 %v2799_v55, %v2794_v29  ;;  %v764_v36 = vadd.f32 %v700_v43, %v2948_v6  ;;  %1401 = vmatmul.mubr.f32.gmra.mrb[18].mxu0 %v1114_v27  ;;  %v513_v55 = vpop.f32.mrb[46].mxu1 }
 0x1ae   :  { %v705_v48 = vmul.f32 0.044715, %v641_v21  ;;  %v3050_v51 = vadd.f32 %v497_v49, %v3571_v16  ;;  %2036 = vtanh.f32 %v875_v0  ;;  %v3593_v33 = vpack.c.bf16 %v2803_v46, %v2801_v60  ;;  %1406 = vmatprep.mubr.f32.mxu0 %v1119_v5  ;;  %v3063_v60 = vpop.f32.mrb[47].mxu1 }
 0x1af   :  { %1905 = vmatpush1.bf16.msra.mxu0 %v3592_v47  ;;  %v765_v25 = vadd.f32 %v701_v52, %v2952_v62  ;;  %v1059_v39 = vadd.f32 0.5, %v995_v35  ;;  %v708_v37 = vmul.f32 0.044715, %v644_v4  ;;  %v645_v29 = vmul.f32 %v581_v1, %v3023_v53  ;;  %v2029_v22 = vpop.eup %2028 }
 0x1b0   :  { %1907 = vmatprep.subr.bf16.mxu0 %v3593_v33  ;;  %v768_v28 = vadd.f32 %v704_v10, %v2971_v20  ;;  %v1118_v43 = vmul.f32 %v1054_v26, %v2749_v40  ;;  %v3060_v49 = vadd.f32 %v501_v63, %v3564_v32  ;;  %2038 = vtanh.f32 %v2983_v41  ;;  %v2031_v46 = vpop.eup %2030 }
 0x1b1   :  { %v3065_v0 = vmul.f32 0.7978846, %v761_v11  ;;  %v1123_v52 = vmul.f32 %v1059_v39, %v2777_v56  ;;  %v994_v3 = vmul.f32 0.5, %v2029_v22  ;;  %v584_v17 = vmul.f32 %v3043_v23, %v3043_v23  ;;  %v3596_v11 = vld [vmem:[#allocation45_spill] sm:$0xff] }
 0x1b2   :  { %v3595_v7 = vpack.c.bf16 %v2813_v38, %v3594_v42  ;;  %v3073_v40 = vmul.f32 0.7978846, %v764_v36  ;;  %1407 = vmatmul.mubr.f32.gmra.mrb[20].mxu0 %v1118_v43  ;;  %v769_v41 = vadd.f32 %v705_v48, %v2986_v19  ;;  %v585_v63 = vmul.f32 %v3050_v51, %v3050_v51  ;;  %v3083_v38 = vpop.f32.mrb[48].mxu1 }
 0x1b3   :  { %v3079_v21 = vadd.f32 %v503_v30, %v3571_v16  ;;  %1412 = vmatprep.mubr.f32.mxu0 %v1123_v52  ;;  %v772_v56 = vadd.f32 %v708_v37, %v2995_v18  ;;  %v1058_v4 = vadd.f32 0.5, %v994_v3  ;;  %v709_v24 = vmul.f32 0.044715, %v645_v29  ;;  %v3091_v30 = vpop.f32.mrb[49].mxu1 }
 0x1b4   :  { %1909 = vmatpush1.bf16.msra.mxu0 %v3595_v7  ;;  %2040 = vtanh.f32 %v3001_v12  ;;  %v2033_v9 = vpop.eup %2032  ;;  %v952_v44 = vmul.f32 0.5, %v2031_v46  ;;  %v3085_v57 = vmul.f32 0.7978846, %v765_v25  ;;  %v3087_v1 = vmul.f32 0.7978846, %v768_v28  ;;  %v3107_v37 = vpop.f32.mrb[50].mxu1 }
 0x1b5   :  { %v588_v59 = vmul.f32 %v3060_v49, %v3060_v49  ;;  %v1122_v27 = vmul.f32 %v1058_v4, %v3596_v11  ;;  %v999_v10 = vmul.f32 0.5, %v2033_v9  ;;  %v648_v5 = vmul.f32 %v584_v17, %v3043_v23 }
 0x1b6   :  { %2042 = vtanh.f32 %v2997_v2  ;;  %v2035_v12 = vpop.eup %2034  ;;  %v3096_v26 = vmul.f32 0.7978846, %v769_v41  ;;  %v649_v35 = vmul.f32 %v585_v63, %v3050_v51  ;;  %v589_v47 = vmul.f32 %v3079_v21, %v3079_v21 }
 0x1b7   :  { %v3102_v36 = vadd.f32 %v507_v13, %v3564_v32  ;;  %v3104_v48 = vmul.f32 0.7978846, %v772_v56  ;;  %1413 = vmatmul.mubr.f32.gmra.mrb[22].mxu0 %v1122_v27  ;;  %v773_v33 = vadd.f32 %v709_v24, %v3023_v53  ;;  %v1063_v25 = vadd.f32 0.5, %v999_v10  ;;  %v3115_v13 = vpop.f32.mrb[51].mxu1 }
 0x1b8   :  { %v998_v39 = vmul.f32 0.5, %v2035_v12  ;;  %v2037_v2 = vpop.eup %2036  ;;  %v1016_v29 = vadd.f32 0.5, %v952_v44  ;;  %v652_v22 = vmul.f32 %v588_v59, %v3060_v49  ;;  %v3112_v28 = vadd.f32 %v3039_v54, %v3571_v16 }
 0x1b9   :  { %2044 = vtanh.f32 %v3018_v34  ;;  %v1127_v43 = vmul.f32 %v1063_v25, %v2836_v15  ;;  %v712_v46 = vmul.f32 0.044715, %v648_v5  ;;  %v1003_v3 = vmul.f32 0.5, %v2037_v2  ;;  %v3126_v15 = vpop.f32.mrb[52].mxu1 }
 0x1ba   :  { %v1062_v52 = vadd.f32 0.5, %v998_v39  ;;  %v2039_v17 = vpop.eup %2038  ;;  %v713_v42 = vmul.f32 0.044715, %v649_v35  ;;  %v653_v7 = vmul.f32 %v589_v47, %v3079_v21  ;;  %v592_v41 = vmul.f32 %v3102_v36, %v3102_v36 }
 0x1bb   :  { %v3122_v63 = vadd.f32 %v513_v55, %v3564_v32  ;;  %1418 = vmatprep.mubr.f32.mxu0 %v1127_v43  ;;  %v1067_v54 = vadd.f32 0.5, %v1003_v3  ;;  %v1002_v56 = vmul.f32 0.5, %v2039_v17  ;;  %2046 = vtanh.f32 %v3003_v45  ;;  %v3134_v55 = vpop.f32.mrb[53].mxu1 }
 0x1bc   :  { %v1126_v34 = vmul.f32 %v1062_v52, %v2807_v31  ;;  %v3128_v4 = vmul.f32 0.7978846, %v773_v33  ;;  %v716_v24 = vmul.f32 0.044715, %v652_v22  ;;  %v593_v9 = vmul.f32 %v3112_v28, %v3112_v28 }
 0x1bd   :  { %v596_v44 = vmul.f32 %v3122_v63, %v3122_v63  ;;  %v1131_v31 = vmul.f32 %v1067_v54, %v2862_v14  ;;  %v1066_v11 = vadd.f32 0.5, %v1002_v56  ;;  %v3139_v45 = vadd.f32 %v3063_v60, %v3571_v16 }
 0x1be   :  { %v2041_v59 = vpop.eup %2040  ;;  %1419 = vmatmul.mubr.f32.gmra.mrb[24].mxu0 %v1126_v34  ;;  %2048 = vtanh.f32 %v3065_v0  ;;  %v3143_v27 = vmul.f32 %v1016_v29, %v2925_v50  ;;  %v776_v10 = vadd.f32 %v712_v46, %v3043_v23  ;;  %v777_v5 = vadd.f32 %v713_v42, %v3050_v51  ;;  %v3153_v0 = vpop.f32.mrb[54].mxu1 }
 0x1bf   :  { %v1007_v12 = vmul.f32 0.5, %v2041_v59  ;;  %1424 = vmatprep.mubr.f32.mxu0 %v1131_v31  ;;  %v1130_v47 = vmul.f32 %v1066_v11, %v2839_v58  ;;  %v717_v14 = vmul.f32 0.044715, %v653_v7  ;;  %v656_v33 = vmul.f32 %v592_v41, %v3102_v36  ;;  %v3157_v29 = vpop.f32.mrb[55].mxu1 }
 0x1c0   :  { %v2043_v35 = vpop.eup %2042  ;;  %v3151_v60 = vadd.f32 %v3083_v38, %v3564_v32  ;;  %v657_v39 = vmul.f32 %v593_v9, %v3112_v28  ;;  %v660_v2 = vmul.f32 %v596_v44, %v3122_v63  ;;  %v780_v22 = vadd.f32 %v716_v24, %v3060_v49  ;;  %v3175_v54 = vpop.f32.mrb[56].mxu1 }
 0x1c1   :  { %v1071_v50 = vadd.f32 0.5, %v1007_v12  ;;  %v1006_v25 = vmul.f32 0.5, %v2043_v35  ;;  %v597_v58 = vmul.f32 %v3139_v45, %v3139_v45  ;;  %v3164_v38 = vadd.f32 %v3091_v30, %v3571_v16  ;;  %v3597_v30 = vld [vmem:[#allocation13_spill] sm:$0xff]  ;;  %v3179_v9 = vpop.f32.mrb[57].mxu1 }
 0x1c2   :  { %1425 = vmatmul.mubr.f32.gmra.mrb[26].mxu0 %v1130_v47  ;;  %2050 = vtanh.f32 %v3085_v57  ;;  %v3167_v46 = vmul.f32 0.7978846, %v776_v10  ;;  %v3169_v52 = vmul.f32 0.7978846, %v777_v5  ;;  %v781_v42 = vadd.f32 %v717_v14, %v3079_v21  ;;  %v3598_v14 = vld [vmem:[#allocation15_spill] sm:$0xff] }
 0x1c3   :  { %v2045_v43 = vpop.eup %2044  ;;  %v1135_v3 = vmul.f32 %v1071_v50, %v2879_v61  ;;  %v1070_v17 = vadd.f32 0.5, %v1006_v25  ;;  %v720_v7 = vmul.f32 0.044715, %v656_v33  ;;  %v600_v34 = vmul.f32 %v3151_v60, %v3151_v60  ;;  %v3200_v25 = vpop.f32.mrb[58].mxu1 }
 0x1c4   :  { %v1011_v41 = vmul.f32 0.5, %v2045_v43  ;;  %v721_v56 = vmul.f32 0.044715, %v657_v39  ;;  %v724_v24 = vmul.f32 0.044715, %v660_v2  ;;  %2052 = vtanh.f32 %v3073_v40 }
 0x1c5   :  { %1430 = vmatprep.mubr.f32.mxu0 %v1135_v3  ;;  %v1134_v57 = vmul.f32 %v1070_v17, %v3597_v30  ;;  %v2047_v61 = vpop.eup %2046  ;;  %v3181_v44 = vmul.f32 0.7978846, %v780_v22  ;;  %v661_v31 = vmul.f32 %v597_v58, %v3139_v45  ;;  %v601_v11 = vmul.f32 %v3164_v38, %v3164_v38  ;;  %v3204_v22 = vpop.f32.mrb[59].mxu1  ;;  %v3599_v3 = vld [vmem:[#allocation20_spill] sm:$0xff] }
 0x1c6   :  { %v1075_v59 = vadd.f32 0.5, %v1011_v41  ;;  %v1010_v10 = vmul.f32 0.5, %v2047_v61  ;;  %v3188_v5 = vadd.f32 %v3107_v37, %v3564_v32  ;;  %v3192_v40 = vadd.f32 %v3115_v13, %v3571_v16 }
 0x1c7   :  { %1431 = vmatmul.mubr.f32.gmra.mrb[28].mxu0 %v1134_v57  ;;  %2054 = vtanh.f32 %v3096_v26  ;;  %v3195_v35 = vmul.f32 0.7978846, %v781_v42  ;;  %v784_v47 = vadd.f32 %v720_v7, %v3102_v36  ;;  %v664_v50 = vmul.f32 %v600_v34, %v3151_v60 }
 0x1c8   :  { %v2049_v12 = vpop.eup %2048  ;;  %v1139_v33 = vmul.f32 %v1075_v59, %v3598_v14  ;;  %v785_v37 = vadd.f32 %v721_v56, %v3112_v28  ;;  %v788_v39 = vadd.f32 %v724_v24, %v3122_v63  ;;  %v1074_v2 = vadd.f32 0.5, %v1010_v10 }
 0x1c9   :  { %v953_v13 = vmul.f32 0.5, %v2049_v12  ;;  %v725_v26 = vmul.f32 0.044715, %v661_v31  ;;  %v665_v58 = vmul.f32 %v601_v11, %v3164_v38  ;;  %v3209_v43 = vadd.f32 %v3126_v15, %v3564_v32 }
 0x1ca   :  { %1436 = vmatprep.mubr.f32.mxu0 %v1139_v33  ;;  %2056 = vtanh.f32 %v3087_v1  ;;  %v1138_v17 = vmul.f32 %v1074_v2, %v3599_v3  ;;  %v604_v7 = vmul.f32 %v3188_v5, %v3188_v5  ;;  %v605_v41 = vmul.f32 %v3192_v40, %v3192_v40  ;;  %v3224_v1 = vpop.f32.mrb[60].mxu1 }
 0x1cb   :  { %v1017_v42 = vadd.f32 0.5, %v953_v13  ;;  %v3217_v30 = vmul.f32 0.7978846, %v784_v47  ;;  %v728_v57 = vmul.f32 0.044715, %v664_v50  ;;  %v3221_v56 = vadd.f32 %v3134_v55, %v3571_v16  ;;  %v3233_v31 = vpop.f32.mrb[61].mxu1 }
 0x1cc   :  { %v2051_v34 = vpop.eup %2050  ;;  %2058 = vtanh.f32 %v3128_v4  ;;  %1437 = vmatmul.mubr.f32.gmra.mrb[30].mxu0 %v1138_v17  ;;  %v608_v61 = vmul.f32 %v3209_v43, %v3209_v43  ;;  %v3231_v59 = vadd.f32 %v3153_v0, %v3564_v32  ;;  %v3235_v11 = vmul.f32 0.7978846, %v785_v37 }
 0x1cd   :  { %v1081_v15 = vmul.f32 %v1017_v42, %v2941_v8  ;;  %v957_v24 = vmul.f32 0.5, %v2051_v34  ;;  %v789_v55 = vadd.f32 %v725_v26, %v3139_v45  ;;  %v729_v4 = vmul.f32 0.044715, %v665_v58 }
 0x1ce   :  { %2060 = vtanh.f32 %v3104_v48  ;;  %v2053_v10 = vpop.eup %2052  ;;  %v3239_v12 = vmul.f32 0.7978846, %v788_v39  ;;  %v668_v47 = vmul.f32 %v604_v7, %v3188_v5  ;;  %v669_v14 = vmul.f32 %v605_v41, %v3192_v40  ;;  %v3250_v48 = vpop.f32.mrb[62].mxu1 }
 0x1cf   :  { %1507 = vmatprep.mubr.f32.mxu0 %v1081_v15  ;;  %v1021_v8 = vadd.f32 0.5, %v957_v24  ;;  %v792_v0 = vadd.f32 %v728_v57, %v3151_v60  ;;  %v956_v33 = vmul.f32 0.5, %v2053_v10  ;;  %v609_v50 = vmul.f32 %v3221_v56, %v3221_v56  ;;  %v3258_v58 = vpop.f32.mrb[63].mxu1 }
 0x1d0   :  { %v3248_v37 = vadd.f32 %v3157_v29, %v3571_v16  ;;  %1508 = vmatmul.mubr.f32.vlgmr.msra.gmra.mrb[0].mxu0 %v3143_v27  ;;  %v672_v13 = vmul.f32 %v608_v61, %v3209_v43  ;;  %v612_v26 = vmul.f32 %v3231_v59, %v3231_v59  ;;  %2062 = vtanh.f32 %v3169_v52 }
 0x1d1   :  { %v2055_v39 = vpop.eup %2054  ;;  %v1085_v2 = vmul.f32 %v1021_v8, %v2952_v62  ;;  %v3260_v3 = vmul.f32 0.7978846, %v789_v55  ;;  %v793_v29 = vadd.f32 %v729_v4, %v3164_v38  ;;  %v1020_v17 = vadd.f32 0.5, %v956_v33 }
 0x1d2   :  { %v961_v42 = vmul.f32 0.5, %v2055_v39  ;;  %v732_v7 = vmul.f32 0.044715, %v668_v47  ;;  %v733_v27 = vmul.f32 0.044715, %v669_v14  ;;  %v3265_v62 = vadd.f32 %v3175_v54, %v3564_v32 }
 0x1d3   :  { %1513 = vmatprep.mubr.f32.mxu0 %v1085_v2  ;;  %2064 = vtanh.f32 %v3167_v46  ;;  %v1084_v52 = vmul.f32 %v1020_v17, %v2948_v6  ;;  %v673_v57 = vmul.f32 %v609_v50, %v3221_v56  ;;  %v613_v15 = vmul.f32 %v3248_v37, %v3248_v37 }
 0x1d4   :  { %v2057_v41 = vpop.eup %2056  ;;  %v1025_v34 = vadd.f32 0.5, %v961_v42  ;;  %v3272_v24 = vmul.f32 0.7978846, %v792_v0  ;;  %v736_v61 = vmul.f32 0.044715, %v672_v13  ;;  %v676_v4 = vmul.f32 %v612_v26, %v3231_v59 }
 0x1d5   :  { %v960_v55 = vmul.f32 0.5, %v2057_v41  ;;  %1514 = vmatmul.mubr.f32.gmra.mrb[2].mxu0 %v1084_v52  ;;  %v616_v46 = vmul.f32 %v3265_v62, %v3265_v62  ;;  %v3280_v6 = vadd.f32 %v3179_v9, %v3571_v16  ;;  %2066 = vtanh.f32 %v3195_v35 }
 0x1d6   :  { %v2059_v10 = vpop.eup %2058  ;;  %v1089_v54 = vmul.f32 %v1025_v34, %v2986_v19  ;;  %v3283_v8 = vmul.f32 0.7978846, %v793_v29  ;;  %v796_v47 = vadd.f32 %v732_v7, %v3188_v5  ;;  %v797_v50 = vadd.f32 %v733_v27, %v3192_v40 }
 0x1d7   :  { %v1024_v14 = vadd.f32 0.5, %v960_v55  ;;  %v965_v0 = vmul.f32 0.5, %v2059_v10  ;;  %v737_v19 = vmul.f32 0.044715, %v673_v57  ;;  %v677_v39 = vmul.f32 %v613_v15, %v3248_v37 }
 0x1d8   :  { %v2061_v33 = vpop.eup %2060  ;;  %1519 = vmatprep.mubr.f32.mxu0 %v1089_v54  ;;  %2068 = vtanh.f32 %v3181_v44  ;;  %v617_v35 = vmul.f32 %v3280_v6, %v3280_v6  ;;  %v800_v26 = vadd.f32 %v736_v61, %v3209_v43  ;;  %v740_v29 = vmul.f32 0.044715, %v676_v4 }
 0x1d9   :  { %v1088_v9 = vmul.f32 %v1024_v14, %v2971_v20  ;;  %v1029_v2 = vadd.f32 0.5, %v965_v0  ;;  %v964_v13 = vmul.f32 0.5, %v2061_v33  ;;  %v680_v17 = vmul.f32 %v616_v46, %v3265_v62 }
 0x1da   :  { %v3296_v42 = vadd.f32 %v3204_v22, %v3571_v16  ;;  %v2063_v7 = vpop.eup %2062  ;;  %v3301_v20 = vadd.f32 %v3200_v25, %v3564_v32  ;;  %2070 = vtanh.f32 %v3235_v11  ;;  %v3304_v41 = vmul.f32 0.7978846, %v796_v47 }
 0x1db   :  { %1520 = vmatmul.mubr.f32.gmra.mrb[4].mxu0 %v1088_v9  ;;  %v1093_v44 = vmul.f32 %v1029_v2, %v3023_v53  ;;  %v1028_v27 = vadd.f32 0.5, %v964_v13  ;;  %v3306_v52 = vmul.f32 0.7978846, %v797_v50  ;;  %v801_v34 = vadd.f32 %v737_v19, %v3221_v56 }
 0x1dc   :  { %v969_v57 = vmul.f32 0.5, %v2063_v7  ;;  %v741_v61 = vmul.f32 0.044715, %v677_v39  ;;  %v681_v53 = vmul.f32 %v617_v35, %v3280_v6  ;;  %2072 = vtanh.f32 %v3217_v30 }
 0x1dd   :  { %v2065_v22 = vpop.eup %2064  ;;  %1525 = vmatprep.mubr.f32.mxu0 %v1093_v44  ;;  %v1092_v15 = vmul.f32 %v1028_v27, %v2995_v18  ;;  %v3312_v25 = vmul.f32 0.7978846, %v800_v26  ;;  %v621_v4 = vmul.f32 %v3296_v42, %v3296_v42  ;;  %v804_v10 = vadd.f32 %v740_v29, %v3231_v59 }
 0x1de   :  { %v1033_v55 = vadd.f32 0.5, %v969_v57  ;;  %v968_v11 = vmul.f32 0.5, %v2065_v22  ;;  %v744_v54 = vmul.f32 0.044715, %v680_v17  ;;  %v620_v46 = vmul.f32 %v3301_v20, %v3301_v20 }
 0x1df   :  { %1526 = vmatmul.mubr.f32.gmra.mrb[6].mxu0 %v1092_v15  ;;  %v3321_v18 = vadd.f32 %v3233_v31, %v3571_v16  ;;  %v2067_v47 = vpop.eup %2066  ;;  %v3326_v0 = vadd.f32 %v3224_v1, %v3564_v32  ;;  %2074 = vtanh.f32 %v3260_v3  ;;  %v865_v33 = vmul.f32 0.7978846, %v801_v34 }
 0x1e0   :  { %v1097_v30 = vmul.f32 %v1033_v55, %v3050_v51  ;;  %v1032_v14 = vadd.f32 0.5, %v968_v11  ;;  %v805_v50 = vadd.f32 %v741_v61, %v3248_v37  ;;  %v745_v19 = vmul.f32 0.044715, %v681_v53 }
 0x1e1   :  { %v973_v39 = vmul.f32 0.5, %v2067_v47  ;;  %v685_v2 = vmul.f32 %v621_v4, %v3296_v42  ;;  %v625_v51 = vmul.f32 %v3321_v18, %v3321_v18  ;;  %2076 = vtanh.f32 %v3239_v12 }
 0x1e2   :  { %v2069_v9 = vpop.eup %2068  ;;  %1531 = vmatprep.mubr.f32.mxu0 %v1097_v30  ;;  %v1096_v31 = vmul.f32 %v1032_v14, %v3043_v23  ;;  %v868_v1 = vmul.f32 0.7978846, %v804_v10  ;;  %v684_v3 = vmul.f32 %v620_v46, %v3301_v20  ;;  %v808_v26 = vadd.f32 %v744_v54, %v3265_v62 }
 0x1e3   :  { %v1037_v13 = vadd.f32 0.5, %v973_v39  ;;  %v972_v35 = vmul.f32 0.5, %v2069_v9  ;;  %v624_v29 = vmul.f32 %v3326_v0, %v3326_v0  ;;  %v689_v23 = vmul.f32 %v625_v51, %v3321_v18 }
 0x1e4   :  { %1532 = vmatmul.mubr.f32.gmra.mrb[8].mxu0 %v1096_v31  ;;  %v3342_v17 = vadd.f32 %v3258_v58, %v3571_v16  ;;  %v2071_v7 = vpop.eup %2070  ;;  %v3347_v27 = vadd.f32 %v3250_v48, %v3564_v32  ;;  %2078 = vtanh.f32 %v3283_v8  ;;  %v869_v34 = vmul.f32 0.7978846, %v805_v50 }
 0x1e5   :  { %v1101_v12 = vmul.f32 %v1037_v13, %v3079_v21  ;;  %v1036_v44 = vadd.f32 0.5, %v972_v35  ;;  %v809_v57 = vadd.f32 %v745_v19, %v3280_v6  ;;  %v749_v22 = vmul.f32 0.044715, %v685_v2 }
 0x1e6   :  { %v977_v15 = vmul.f32 0.5, %v2071_v7  ;;  %v2073_v61 = vpop.eup %2072  ;;  %v748_v53 = vmul.f32 0.044715, %v684_v3  ;;  %v629_v21 = vmul.f32 %v3342_v17, %v3342_v17  ;;  %2080 = vtanh.f32 %v3272_v24 }
 0x1e7   :  { %1537 = vmatprep.mubr.f32.mxu0 %v1101_v12  ;;  %v1100_v16 = vmul.f32 %v1036_v44, %v3060_v49  ;;  %v688_v32 = vmul.f32 %v624_v29, %v3326_v0  ;;  %v976_v48 = vmul.f32 0.5, %v2073_v61  ;;  %v753_v8 = vmul.f32 0.044715, %v689_v23 }
 0x1e8   :  { %v1041_v58 = vadd.f32 0.5, %v977_v15  ;;  %v872_v55 = vmul.f32 0.7978846, %v808_v26  ;;  %v628_v11 = vmul.f32 %v3347_v27, %v3347_v27  ;;  %v693_v4 = vmul.f32 %v629_v21, %v3342_v17 }
 0x1e9   :  { %1538 = vmatmul.mubr.f32.gmra.mrb[10].mxu0 %v1100_v16  ;;  %2082 = vtanh.f32 %v3306_v52  ;;  %v2075_v49 = vpop.eup %2074  ;;  %v873_v10 = vmul.f32 0.7978846, %v809_v57  ;;  %v813_v54 = vadd.f32 %v749_v22, %v3296_v42  ;;  %v1040_v46 = vadd.f32 0.5, %v976_v48 }
 0x1ea   :  { %v1105_v24 = vmul.f32 %v1041_v58, %v3112_v28  ;;  %v812_v47 = vadd.f32 %v748_v53, %v3301_v20  ;;  %v981_v30 = vmul.f32 0.5, %v2075_v49  ;;  %v757_v14 = vmul.f32 0.044715, %v693_v4 }
 0x1eb   :  { %2084 = vtanh.f32 %v3304_v41  ;;  %v2077_v50 = vpop.eup %2076  ;;  %v752_v19 = vmul.f32 0.044715, %v688_v32  ;;  %v1104_v39 = vmul.f32 %v1040_v46, %v3102_v36  ;;  %v817_v52 = vadd.f32 %v753_v8, %v3321_v18 }
 0x1ec   :  { %1543 = vmatprep.mubr.f32.mxu0 %v1105_v24  ;;  %2086 = vtanh.f32 %v865_v33  ;;  %v1045_v9 = vadd.f32 0.5, %v981_v30  ;;  %v692_v31 = vmul.f32 %v628_v11, %v3347_v27  ;;  %v980_v2 = vmul.f32 0.5, %v2077_v50 }
 0x1ed   :  { %2088 = vtanh.f32 %v3312_v25  ;;  %v877_v28 = vmul.f32 0.7978846, %v813_v54  ;;  %1544 = vmatmul.mubr.f32.gmra.mrb[12].mxu0 %v1104_v39  ;;  %v821_v3 = vadd.f32 %v757_v14, %v3342_v17  ;;  %v876_v36 = vmul.f32 0.7978846, %v812_v47 }
 0x1ee   :  { %2090 = vtanh.f32 %v869_v34  ;;  %v2079_v51 = vpop.eup %2078  ;;  %v1109_v41 = vmul.f32 %v1045_v9, %v3139_v45  ;;  %v1044_v13 = vadd.f32 0.5, %v980_v2  ;;  %v881_v35 = vmul.f32 0.7978846, %v817_v52 }
 0x1ef   :  { %2092 = vtanh.f32 %v868_v1  ;;  %v985_v26 = vmul.f32 0.5, %v2079_v51  ;;  %v816_v29 = vadd.f32 %v752_v19, %v3326_v0  ;;  %v756_v23 = vmul.f32 0.044715, %v692_v31 }
 0x1f0   :  { %2094 = vtanh.f32 %v873_v10  ;;  %v2081_v33 = vpop.eup %2080  ;;  %1549 = vmatprep.mubr.f32.mxu0 %v1109_v41  ;;  %v1108_v25 = vmul.f32 %v1044_v13, %v3122_v63  ;;  %v885_v44 = vmul.f32 0.7978846, %v821_v3 }
 0x1f1   :  { %2096 = vtanh.f32 %v872_v55  ;;  %v1049_v7 = vadd.f32 0.5, %v985_v26  ;;  %v984_v12 = vmul.f32 0.5, %v2081_v33  ;;  %v880_v15 = vmul.f32 0.7978846, %v816_v29 }
 0x1f2   :  { %2098 = vtanh.f32 %v877_v28  ;;  %1550 = vmatmul.mubr.f32.gmra.mrb[14].mxu0 %v1108_v25  ;;  %v820_v61 = vadd.f32 %v756_v23, %v3347_v27 }
 0x1f3   :  { %v2083_v45 = vpop.eup %2082  ;;  %v1113_v1 = vmul.f32 %v1049_v7, %v3164_v38  ;;  %v1048_v34 = vadd.f32 0.5, %v984_v12  ;;  %2100 = vtanh.f32 %v881_v35 }
 0x1f4   :  { %v989_v57 = vmul.f32 0.5, %v2083_v45  ;;  %2102 = vtanh.f32 %v876_v36  ;;  %v884_v4 = vmul.f32 0.7978846, %v820_v61 }
 0x1f5   :  { %v2085_v22 = vpop.eup %2084  ;;  %1555 = vmatprep.mubr.f32.mxu0 %v1113_v1  ;;  %v1112_v63 = vmul.f32 %v1048_v34, %v3151_v60  ;;  %2104 = vtanh.f32 %v885_v44 }
 0x1f6   :  { %v2087_v53 = vpop.eup %2086  ;;  %v1053_v16 = vadd.f32 0.5, %v989_v57  ;;  %v988_v21 = vmul.f32 0.5, %v2085_v22  ;;  %2106 = vtanh.f32 %v880_v15  ;;  %v3600_v57 = vld [vmem:[#allocation12_spill] sm:$0xff] }
 0x1f7   :  { %v2089_v58 = vpop.eup %2088  ;;  %v993_v32 = vmul.f32 0.5, %v2087_v53  ;;  %1556 = vmatmul.mubr.f32.gmra.mrb[16].mxu0 %v1112_v63  ;;  %2108 = vtanh.f32 %v884_v4  ;;  %v3602_v15 = vsub.s32 1, %v3600_v57 }
 0x1f8   :  { %v2091_v48 = vpop.eup %2090  ;;  %v1117_v38 = vmul.f32 %v1053_v16, %v3192_v40  ;;  %v1052_v8 = vadd.f32 0.5, %v988_v21  ;;  %v992_v55 = vmul.f32 0.5, %v2089_v58 }
 0x1f9   :  { %v2093_v11 = vpop.eup %2092  ;;  %v1057_v49 = vadd.f32 0.5, %v993_v32  ;;  %v997_v10 = vmul.f32 0.5, %v2091_v48 }
 0x1fa   :  { %v2095_v54 = vpop.eup %2094  ;;  %1561 = vmatprep.mubr.f32.mxu0 %v1117_v38  ;;  %v1116_v60 = vmul.f32 %v1052_v8, %v3188_v5  ;;  %v1056_v24 = vadd.f32 0.5, %v992_v55  ;;  %v996_v46 = vmul.f32 0.5, %v2093_v11 }
 0x1fb   :  { %v2097_v47 = vpop.eup %2096  ;;  %v1121_v30 = vmul.f32 %v1057_v49, %v3221_v56  ;;  %v1061_v14 = vadd.f32 0.5, %v997_v10  ;;  %v1001_v50 = vmul.f32 0.5, %v2095_v54 }
 0x1fc   :  { %v2099_v40 = vpop.eup %2098  ;;  %1562 = vmatmul.mubr.f32.gmra.mrb[18].mxu0 %v1116_v60  ;;  %v1120_v31 = vmul.f32 %v1056_v24, %v3209_v43  ;;  %v1060_v2 = vadd.f32 0.5, %v996_v46  ;;  %v1000_v5 = vmul.f32 0.5, %v2097_v47 }
 0x1fd   :  { %1567 = vmatprep.mubr.f32.mxu0 %v1121_v30  ;;  %v1125_v19 = vmul.f32 %v1061_v14, %v3248_v37  ;;  %v1065_v39 = vadd.f32 0.5, %v1001_v50  ;;  %v1005_v52 = vmul.f32 0.5, %v2099_v40  ;;  %v2101_v9 = vpop.eup %2100 }
 0x1fe   :  { %v2103_v28 = vpop.eup %2102  ;;  %v1009_v41 = vmul.f32 0.5, %v2101_v9  ;;  %v1124_v3 = vmul.f32 %v1060_v2, %v3231_v59  ;;  %v1064_v36 = vadd.f32 0.5, %v1000_v5 }
 0x1ff   :  { %v1129_v56 = vmul.f32 %v1065_v39, %v3280_v6  ;;  %v1069_v51 = vadd.f32 0.5, %v1005_v52  ;;  %v2105_v13 = vpop.eup %2104  ;;  %v1004_v37 = vmul.f32 0.5, %v2103_v28 }
 0x200   :  { %1568 = vmatmul.mubr.f32.gmra.mrb[20].mxu0 %v1120_v31  ;;  %v2107_v35 = vpop.eup %2106  ;;  %v1073_v43 = vadd.f32 0.5, %v1009_v41  ;;  %v1013_v33 = vmul.f32 0.5, %v2105_v13  ;;  %v1128_v29 = vmul.f32 %v1064_v36, %v3265_v62 }
 0x201   :  { %1573 = vmatprep.mubr.f32.mxu0 %v1125_v19  ;;  %v1133_v26 = vmul.f32 %v1069_v51, %v3296_v42  ;;  %v1068_v23 = vadd.f32 0.5, %v1004_v37  ;;  %v1008_v25 = vmul.f32 0.5, %v2107_v35  ;;  %v2109_v7 = vpop.eup %2108 }
 0x202   :  { %v1137_v6 = vmul.f32 %v1073_v43, %v3321_v18  ;;  %v1077_v12 = vadd.f32 0.5, %v1013_v33  ;;  %v1012_v44 = vmul.f32 0.5, %v2109_v7  ;;  %v1270_v18 = vld [vmem:[%s3451_s4] sm:$0x3]  ;;  %s2211_s4 = smov [#allocation8]  }
 0x203   :  { %v1132_v59 = vmul.f32 %v1068_v23, %v3301_v20  ;;  %v1072_v45 = vadd.f32 0.5, %v1008_v25  ;;  %v3601_v20 = vsub.s32 0, %v3600_v57  ;;  %v3398_v61 = vrot.slane %v1270_v18, %v3602_v15  ;;  %s1641_s8 = sshll.u32 %s2211_s4, 4  ;;  %s1642_s8 = int_to_ptr.vmem [resolvable:$true] %s1641_s8 }
 0x204   :  { %1574 = vmatmul.mubr.f32.gmra.mrb[22].mxu0 %v1124_v3  ;;  %v1141_v42 = vmul.f32 %v1077_v12, %v3342_v17  ;;  %v1076_v34 = vadd.f32 0.5, %v1012_v44  ;;  %s2176_s9 = scalar_lea.vmem %s1642_s8, 4096  ;;  %p2181_p11 = scmp.lt.s32.totalorder %s1642_s8, %s1642_s8 }
 0x205   :  { %1579 = vmatprep.mubr.f32.mxu0 %v1129_v56  ;;  %v1136_v1 = vmul.f32 %v1072_v45, %v3326_v0  ;;  %v3394_v22 = vrot.slane %v1270_v18, %v3601_v20  ;;  %p2177_p10 = scmp.ne.s32.totalorder %s1642_s8, %s2176_s9  ;;  %p2182_p12 = scmp.lt.s32.totalorder %s2176_s9, %s2176_s9 }
 0x206   :  { %v1140_v62 = vmul.f32 %v1076_v34, %v3347_v27 }
 0x207   :  { %p2183_p13 = por %p2182_p12, %p2181_p11 }
 0x208   :  { %1580 = vmatmul.mubr.f32.gmra.mrb[24].mxu0 %v1128_v29 }
 0x209   :  { %1585 = vmatprep.mubr.f32.mxu0 %v1133_v26  ;;  %p2184_p0 = pnand %p2183_p13, %p2177_p10 }
 0x20c   :  { %1586 = vmatmul.mubr.f32.gmra.mrb[26].mxu0 %v1132_v59 }
 0x20d   :  { %1591 = vmatprep.mubr.f32.mxu0 %v1137_v6 }
 0x210   :  { %1592 = vmatmul.mubr.f32.gmra.mrb[28].mxu0 %v1136_v1 }
 0x211   :  { %1597 = vmatprep.mubr.f32.mxu0 %v1141_v42 }
 0x214   :  { %1598 = vmatmul.mubr.f32.gmra.mrb[30].mxu0 %v1140_v62 }
 0x2a3   :  { %v1509_v17 = vpop.f32.mrb[0].mxu0 }
 0x2a4   :  { %v1910_v0 = vadd.f32 %v1509_v17, %v3394_v22  ;;  %v1511_v53 = vpop.f32.mrb[1].mxu0 }
 0x2a5   :  { %v1911_v63 = vadd.f32 %v1511_v53, %v3398_v61 }
 0x2a6   :  { %1604 = vst [vmem:[#allocation8] sm:$0xff] %v1910_v0 }
 0x2a7   :  { %1605 = vst [vmem:[#allocation8 + $0x8] sm:$0xff] %v1911_v63 }
 0x2a8   :  { %v1515_v27 = vpop.f32.mrb[2].mxu0 }
 0x2a9   :  { %v1912_v16 = vadd.f32 %v1515_v27, %v3394_v22  ;;  %v1517_v21 = vpop.f32.mrb[3].mxu0 }
 0x2aa   :  { %v1913_v58 = vadd.f32 %v1517_v21, %v3398_v61 }
 0x2ab   :  { %1606 = vst [vmem:[#allocation8 + $0x10] sm:$0xff] %v1912_v16 }
 0x2ac   :  { %1607 = vst [vmem:[#allocation8 + $0x18] sm:$0xff] %v1913_v58 }
 0x2ae   :  { %v1521_v32 = vpop.f32.mrb[4].mxu0 }
 0x2af   :  { %v1914_v48 = vadd.f32 %v1521_v32, %v3394_v22  ;;  %v1523_v38 = vpop.f32.mrb[5].mxu0 }
 0x2b0   :  { %v1915_v8 = vadd.f32 %v1523_v38, %v3398_v61 }
 0x2b1   :  { %1608 = vst [vmem:[#allocation8 + $0x20] sm:$0xff] %v1914_v48 }
 0x2b2   :  { %1609 = vst [vmem:[#allocation8 + $0x28] sm:$0xff] %v1915_v8  ;;  %v1527_v55 = vpop.f32.mrb[6].mxu0 }
 0x2b3   :  { %v1916_v11 = vadd.f32 %v1527_v55, %v3394_v22  ;;  %v1529_v4 = vpop.f32.mrb[7].mxu0 }
 0x2b4   :  { %v1917_v49 = vadd.f32 %v1529_v4, %v3398_v61 }
 0x2b5   :  { %1610 = vst [vmem:[#allocation8 + $0x30] sm:$0xff] %v1916_v11 }
 0x2b6   :  { %1611 = vst [vmem:[#allocation8 + $0x38] sm:$0xff] %v1917_v49 }
 0x2b7   :  { %v1533_v10 = vpop.f32.mrb[8].mxu0 }
 0x2b8   :  { %v1918_v54 = vadd.f32 %v1533_v10, %v3394_v22  ;;  %v1535_v60 = vpop.f32.mrb[9].mxu0 }
 0x2b9   :  { %v1919_v24 = vadd.f32 %v1535_v60, %v3398_v61 }
 0x2ba   :  { %1612 = vst [vmem:[#allocation8 + $0x40] sm:$0xff] %v1918_v54 }
 0x2bb   :  { %1613 = vst [vmem:[#allocation8 + $0x48] sm:$0xff] %v1919_v24 }
 0x2bc   :  { %v1539_v46 = vpop.f32.mrb[10].mxu0 }
 0x2bd   :  { %v1920_v47 = vadd.f32 %v1539_v46, %v3394_v22  ;;  %v1541_v30 = vpop.f32.mrb[11].mxu0 }
 0x2be   :  { %v1921_v14 = vadd.f32 %v1541_v30, %v3398_v61 }
 0x2bf   :  { %1614 = vst [vmem:[#allocation8 + $0x50] sm:$0xff] %v1920_v47 }
 0x2c0   :  { %1615 = vst [vmem:[#allocation8 + $0x58] sm:$0xff] %v1921_v14  ;;  %v1545_v50 = vpop.f32.mrb[12].mxu0 }
 0x2c1   :  { %v1922_v40 = vadd.f32 %v1545_v50, %v3394_v22  ;;  %v1547_v19 = vpop.f32.mrb[13].mxu0 }
 0x2c2   :  { %v1923_v39 = vadd.f32 %v1547_v19, %v3398_v61 }
 0x2c3   :  { %1616 = vst [vmem:[#allocation8 + $0x60] sm:$0xff] %v1922_v40 }
 0x2c4   :  { %1617 = vst [vmem:[#allocation8 + $0x68] sm:$0xff] %v1923_v39 }
 0x2c5   :  { %v1551_v52 = vpop.f32.mrb[14].mxu0 }
 0x2c6   :  { %v1924_v9 = vadd.f32 %v1551_v52, %v3394_v22  ;;  %v1553_v31 = vpop.f32.mrb[15].mxu0 }
 0x2c7   :  { %v1925_v2 = vadd.f32 %v1553_v31, %v3398_v61 }
 0x2c8   :  { %1618 = vst [vmem:[#allocation8 + $0x70] sm:$0xff] %v1924_v9 }
 0x2c9   :  { %1619 = vst [vmem:[#allocation8 + $0x78] sm:$0xff] %v1925_v2 }
 0x2ca   :  { %v1557_v5 = vpop.f32.mrb[16].mxu0 }
 0x2cb   :  { %v1926_v28 = vadd.f32 %v1557_v5, %v3394_v22  ;;  %v1559_v56 = vpop.f32.mrb[17].mxu0 }
 0x2cc   :  { %v1927_v51 = vadd.f32 %v1559_v56, %v3398_v61 }
 0x2cd   :  { %1620 = vst [vmem:[#allocation8 + $0x80] sm:$0xff] %v1926_v28 }
 0x2ce   :  { %1621 = vst [vmem:[#allocation8 + $0x88] sm:$0xff] %v1927_v51 }
 0x2cf   :  { %v1563_v41 = vpop.f32.mrb[18].mxu0 }
 0x2d0   :  { %v1928_v13 = vadd.f32 %v1563_v41, %v3394_v22  ;;  %v1565_v3 = vpop.f32.mrb[19].mxu0 }
 0x2d1   :  { %v1929_v36 = vadd.f32 %v1565_v3, %v3398_v61 }
 0x2d2   :  { %1622 = vst [vmem:[#allocation8 + $0x90] sm:$0xff] %v1928_v13 }
 0x2d3   :  { %1623 = vst [vmem:[#allocation8 + $0x98] sm:$0xff] %v1929_v36  ;;  %v1569_v37 = vpop.f32.mrb[20].mxu0 }
 0x2d4   :  { %v1930_v35 = vadd.f32 %v1569_v37, %v3394_v22  ;;  %v1571_v26 = vpop.f32.mrb[21].mxu0 }
 0x2d5   :  { %v1931_v43 = vadd.f32 %v1571_v26, %v3398_v61 }
 0x2d6   :  { %1624 = vst [vmem:[#allocation8 + $0xa0] sm:$0xff] %v1930_v35 }
 0x2d7   :  { %1625 = vst [vmem:[#allocation8 + $0xa8] sm:$0xff] %v1931_v43  ;;  %v1575_v33 = vpop.f32.mrb[22].mxu0 }
 0x2d8   :  { %v1932_v29 = vadd.f32 %v1575_v33, %v3394_v22  ;;  %v1577_v23 = vpop.f32.mrb[23].mxu0 }
 0x2d9   :  { %v1933_v25 = vadd.f32 %v1577_v23, %v3398_v61 }
 0x2da   :  { %1626 = vst [vmem:[#allocation8 + $0xb0] sm:$0xff] %v1932_v29 }
 0x2db   :  { %1627 = vst [vmem:[#allocation8 + $0xb8] sm:$0xff] %v1933_v25  ;;  %v1581_v7 = vpop.f32.mrb[24].mxu0 }
 0x2dc   :  { %v1934_v6 = vadd.f32 %v1581_v7, %v3394_v22  ;;  %v1583_v12 = vpop.f32.mrb[25].mxu0 }
 0x2dd   :  { %v1935_v59 = vadd.f32 %v1583_v12, %v3398_v61 }
 0x2de   :  { %1628 = vst [vmem:[#allocation8 + $0xc0] sm:$0xff] %v1934_v6 }
 0x2df   :  { %1629 = vst [vmem:[#allocation8 + $0xc8] sm:$0xff] %v1935_v59  ;;  %v1587_v45 = vpop.f32.mrb[26].mxu0 }
 0x2e0   :  { %v1936_v44 = vadd.f32 %v1587_v45, %v3394_v22  ;;  %v1589_v42 = vpop.f32.mrb[27].mxu0 }
 0x2e1   :  { %v1937_v1 = vadd.f32 %v1589_v42, %v3398_v61 }
 0x2e2   :  { %1630 = vst [vmem:[#allocation8 + $0xd0] sm:$0xff] %v1936_v44 }
 0x2e3   :  { %1631 = vst [vmem:[#allocation8 + $0xd8] sm:$0xff] %v1937_v1  ;;  %v1593_v34 = vpop.f32.mrb[28].mxu0 }
 0x2e4   :  { %v1938_v62 = vadd.f32 %v1593_v34, %v3394_v22  ;;  %v1595_v18 = vpop.f32.mrb[29].mxu0 }
 0x2e5   :  { %v1939_v57 = vadd.f32 %v1595_v18, %v3398_v61 }
 0x2e6   :  { %1632 = vst [vmem:[#allocation8 + $0xe0] sm:$0xff] %v1938_v62 }
 0x2e7   :  { %1633 = vst [vmem:[#allocation8 + $0xe8] sm:$0xff] %v1939_v57  ;;  %v1599_v20 = vpop.f32.mrb[30].mxu0 }
 0x2e8   :  { %v1940_v15 = vadd.f32 %v1599_v20, %v3394_v22  ;;  %v1601_v17 = vpop.f32.mrb[31].mxu0 }
 0x2e9   :  { %v1941_v0 = vadd.f32 %v1601_v17, %v3398_v61 }
 0x2ea   :  { %1634 = vst [vmem:[#allocation8 + $0xf0] sm:$0xff] %v1940_v15 }
 0x2eb   :  { %1635 = vst [vmem:[#allocation8 + $0xf8] sm:$0xff] %v1941_v0 }
 0x2ec   :  { %2187 = shalt.err (!%p2184_p0)
}
 0x2ed   :  { %s2188_s12 = scalar_lea.hbm %s3452_s5, 4096 }
 0x2ee   :  { %p2189_p1 = scmp.ne.s32.totalorder %s3452_s5, %s2188_s12  ;;  %p2192_p2 = scmp.lt.u32.totalorder %s2188_s12, %s3452_s5 }
 0x2f0   :  { %p2194_p3 = pnand %p2192_p2, %p2189_p1 }
 0x2f2   :  { %2197 = shalt.err (!%p2194_p3)
}
 0x2f3   :  { %1647 = dma.vmem_to_hbm [thread:$0]  %s1642_s8, 4096, %s3452_s5, [#allocation4], %s2208_s1, %s2208_s1, %s2209_s17  }
 0x2f4   :  { %2202 = dma.done.wait [#allocation4], 4096  }
 0x2f5   :  { %2203 = vsyncadd [#allocation4], 4294963200 }
 0x2f6   :  { %1651 = vsyncpa [#allocation3], 1 }
 0x2f7   :  { %1652 = vsyncpa [#allocation6], 1 }
 0x2f8   :  { %1653 = vsyncpa [#allocation4], 1 }

</bundles_post_ra>
